<compile_context>
chip_gen: v6e
topology: v6e:2x2x1
jax: 0.10.0
libtpu: 0.0.40
codegen_flags: <defaults>
</compile_context>

<pallas_src>
import functools

import jax
import jax.numpy as jnp
from jax.experimental import pallas as pl
from jax.experimental.pallas import tpu as pltpu  # noqa: F401  (TPU backend assumed)

# ----------------------------- config ---------------------------------------
IMG = 16
PATCH = 4
IN_CH = 3
EMBED_DIM = 32
NUM_HEADS = 4
HEAD_DIM = EMBED_DIM // NUM_HEADS
DEPTH = 2
MLP_DIM = 4 * EMBED_DIM
DECODER_DIM = 64
MASK_RATIO = 0.75
OUT_DIM = IN_CH * IMG * IMG          # 768 = 6 * 128 (lane-dense final store)
LN_EPS = 1e-6


# ----------------------------- Pallas kernels -------------------------------
def _patch_embed_kernel(x_ref, w_ref, b_ref, o_ref):
    o_ref[...] = (jnp.dot(x_ref[...], w_ref[...],
                          preferred_element_type=jnp.float32)
                  + b_ref[...]).astype(o_ref.dtype)


def patch_embed(x_cols, w, b):
    """Conv2d(patch, stride=patch) as im2col @ W + b, single VMEM-resident call."""
    M, K = x_cols.shape
    N = w.shape[1]
    return pl.pallas_call(
        _patch_embed_kernel,
        out_shape=jax.ShapeDtypeStruct((M, N), jnp.float32),
    )(x_cols, w, b.reshape(1, N))


def _encdec_kernel(x_ref, *refs, B, Nk, depth):
    """Fused encoder+decoder: [ViT block]*depth -> LN -> mean pool -> MLP head.

    All activations stay in VMEM / vregs; only the (B, OUT_DIM) prediction is
    stored back to HBM.
    """
    D = EMBED_DIM
    H = NUM_HEADS
    hd = HEAD_DIM
    scale = 1.0 / float(hd) ** 0.5

    block_refs = refs[: depth * 12]
    norm_g, norm_b, d1w, d1b, d2w, d2b = refs[depth * 12: depth * 12 + 6]
    o_ref = refs[-1]

    def _ln(v, g_ref, b_ref):
        m = jnp.mean(v, axis=-1, keepdims=True)
        var = jnp.mean(jnp.square(v - m), axis=-1, keepdims=True)
        return (v - m) * jax.lax.rsqrt(var + LN_EPS) * g_ref[...] + b_ref[...]

    xf = x_ref[...].astype(jnp.float32)                 # (B*Nk, D)

    for blk in range(depth):
        (ln1g, ln1b, qkvw, qkvb, projw, projb,
         ln2g, ln2b, fc1w, fc1b, fc2w, fc2b) = block_refs[blk * 12:(blk + 1) * 12]

        # ----- multi-head self attention (all heads, all batches, one shot) -
        h = _ln(xf, ln1g, ln1b)
        qkv = jnp.dot(h, qkvw[...], preferred_element_type=jnp.float32) + qkvb[...]

        batch_outs = []
        for b in range(B):                              # B, H static -> unrolled
            rows = qkv[b * Nk:(b + 1) * Nk, :]          # (Nk, 3D)
            head_outs = []
            for hh in range(H):
                q = rows[:, hh * hd:(hh + 1) * hd]
                k = rows[:, D + hh * hd: D + (hh + 1) * hd]
                v = rows[:, 2 * D + hh * hd: 2 * D + (hh + 1) * hd]
                s = jnp.dot(q, k.T, preferred_element_type=jnp.float32) * scale
                s = s - jnp.max(s, axis=-1, keepdims=True)
                p = jnp.exp(s)
                p = p * pl.reciprocal(jnp.sum(p, axis=-1, keepdims=True),
                                      approx=True)
                head_outs.append(jnp.dot(p, v, preferred_element_type=jnp.float32))
            batch_outs.append(jnp.concatenate(head_outs, axis=-1))   # (Nk, D)
        attn = jnp.concatenate(batch_outs, axis=0)                   # (B*Nk, D)
        attn = jnp.dot(attn, projw[...], preferred_element_type=jnp.float32) + projb[...]
        xf = xf + attn                                               # residual

        # ----- MLP ----------------------------------------------------------
        h = _ln(xf, ln2g, ln2b)
        h = jnp.dot(h, fc1w[...], preferred_element_type=jnp.float32) + fc1b[...]
        # TODO(synk): timm ViT uses exact erf GELU; tanh approximation used here.
        h = jax.nn.gelu(h, approximate=True)
        h = jnp.dot(h, fc2w[...], preferred_element_type=jnp.float32) + fc2b[...]
        xf = xf + h                                                  # residual

    # ----- final norm + mean pool + decoder (Linear -> ReLU -> Linear) ------
    xf = _ln(xf, norm_g, norm_b)                                     # (B*Nk, D)
    pooled = jnp.concatenate(
        [jnp.mean(xf[b * Nk:(b + 1) * Nk, :], axis=0, keepdims=True)
         for b in range(B)], axis=0)                                 # (B, D)
    dh = jnp.dot(pooled, d1w[...], preferred_element_type=jnp.float32) + d1b[...]
    dh = jnp.maximum(dh, 0.0)
    pred = jnp.dot(dh, d2w[...], preferred_element_type=jnp.float32) + d2b[...]
    o_ref[...] = pred.astype(o_ref.dtype)                            # (B, 768)


def encoder_decoder(x_flat, params, *, B, Nk):
    """One fused pallas_call for the whole post-masking network."""
    D = EMBED_DIM
    inputs = [x_flat]
    for p in params["blocks"]:
        inputs += [
            p["ln1_g"].reshape(1, D), p["ln1_b"].reshape(1, D),
            p["qkv_w"], p["qkv_b"].reshape(1, 3 * D),
            p["proj_w"], p["proj_b"].reshape(1, D),
            p["ln2_g"].reshape(1, D), p["ln2_b"].reshape(1, D),
            p["fc1_w"], p["fc1_b"].reshape(1, MLP_DIM),
            p["fc2_w"], p["fc2_b"].reshape(1, D),
        ]
    inputs += [
        params["norm_g"].reshape(1, D), params["norm_b"].reshape(1, D),
        params["dec1_w"], params["dec1_b"].reshape(1, DECODER_DIM),
        params["dec2_w"], params["dec2_b"].reshape(1, OUT_DIM),
    ]
    return pl.pallas_call(
        functools.partial(_encdec_kernel, B=B, Nk=Nk,
                          depth=len(params["blocks"])),
        out_shape=jax.ShapeDtypeStruct((B, OUT_DIM), jnp.float32),
    )(*inputs)


# ----------------------------- parameters -----------------------------------
def init_params(key):
    def nrm(k, shape, scale=0.02):
        return scale * jax.random.normal(k, shape, dtype=jnp.float32)

    keys = iter(jax.random.split(key, 64))
    params = {
        "pe_w": nrm(next(keys), (IN_CH * PATCH * PATCH, EMBED_DIM)),
        "pe_b": jnp.zeros((EMBED_DIM,), jnp.float32),
        "norm_g": jnp.ones((EMBED_DIM,), jnp.float32),
        "norm_b": jnp.zeros((EMBED_DIM,), jnp.float32),
        "dec1_w": nrm(next(keys), (EMBED_DIM, DECODER_DIM)),
        "dec1_b": jnp.zeros((DECODER_DIM,), jnp.float32),
        "dec2_w": nrm(next(keys), (DECODER_DIM, OUT_DIM)),
        "dec2_b": jnp.zeros((OUT_DIM,), jnp.float32),
        "blocks": [],
    }
    for _ in range(DEPTH):
        params["blocks"].append({
            "ln1_g": jnp.ones((EMBED_DIM,), jnp.float32),
            "ln1_b": jnp.zeros((EMBED_DIM,), jnp.float32),
            "qkv_w": nrm(next(keys), (EMBED_DIM, 3 * EMBED_DIM)),
            "qkv_b": jnp.zeros((3 * EMBED_DIM,), jnp.float32),
            "proj_w": nrm(next(keys), (EMBED_DIM, EMBED_DIM)),
            "proj_b": jnp.zeros((EMBED_DIM,), jnp.float32),
            "ln2_g": jnp.ones((EMBED_DIM,), jnp.float32),
            "ln2_b": jnp.zeros((EMBED_DIM,), jnp.float32),
            "fc1_w": nrm(next(keys), (EMBED_DIM, MLP_DIM)),
            "fc1_b": jnp.zeros((MLP_DIM,), jnp.float32),
            "fc2_w": nrm(next(keys), (MLP_DIM, EMBED_DIM)),
            "fc2_b": jnp.zeros((EMBED_DIM,), jnp.float32),
        })
    return params


# ----------------------------- model forward --------------------------------
def mae_forward(params, x, mask_key):
    B, C, H, W = x.shape
    Hp, Wp = H // PATCH, W // PATCH
    N = Hp * Wp
    D = EMBED_DIM

    # patch_embed: Conv2d(C, D, kernel=patch, stride=patch) as im2col + matmul.
    xc = x.reshape(B, C, Hp, PATCH, Wp, PATCH)
    xc = xc.transpose(0, 2, 4, 1, 3, 5).reshape(B * N, C * PATCH * PATCH)
    patches = patch_embed(xc, params["pe_w"], params["pe_b"]).reshape(B, N, D)

    # random masking (torch.rand / argsort / gather equivalent; plain-JAX glue).
    num_mask = int(MASK_RATIO * N)
    Nk = N - num_mask
    noise = jax.random.uniform(mask_key, (B, N))
    ids_shuffle = jnp.argsort(noise, axis=1)
    ids_keep = ids_shuffle[:, :Nk]
    patches_keep = jnp.take_along_axis(patches, ids_keep[:, :, None], axis=1)

    # fused: encoder blocks + final norm + mean pool + decoder (one kernel).
    pred = encoder_decoder(patches_keep.reshape(B * Nk, D), params, B=B, Nk=Nk)
    return pred.reshape(B, IN_CH, IMG, IMG)


# ----------------------------- main ------------------------------------------
if __name__ == "__main__":
    root = jax.random.PRNGKey(0)
    k_params, k_input, k_mask = jax.random.split(root, 3)

    params = init_params(k_params)
    x = jax.random.normal(k_input, (2, IN_CH, IMG, IMG), dtype=jnp.float32)

    fwd = jax.jit(mae_forward)
    pred = fwd(params, x, k_mask)
    jax.block_until_ready(pred)

    assert pred.shape == (2, IN_CH, IMG, IMG)
    assert pred.dtype == jnp.float32
    print("KERNEL_OK")
</pallas_src>

<mosaic_0001>
module attributes {stable_mosaic.version = 11 : i64} {
  func.func @_patch_embed_kernel(%arg0: memref<32x48xf32, #tpu.memory_space<vmem>>, %arg1: memref<48x32xf32, #tpu.memory_space<vmem>>, %arg2: memref<1x32xf32, #tpu.memory_space<vmem>>, %arg3: memref<32x32xf32, #tpu.memory_space<vmem>>) attributes {dimension_semantics = [], scalar_prefetch = 0 : i64, scratch_operands = 0 : i64, tpu.core_type = #tpu.core_type<tc>} {
    %c0 = arith.constant 0 : index
    %c0_0 = arith.constant 0 : index
    %0 = vector.load %arg0[%c0, %c0_0] : memref<32x48xf32, #tpu.memory_space<vmem>>, vector<32x48xf32>
    %c0_1 = arith.constant 0 : index
    %c0_2 = arith.constant 0 : index
    %1 = vector.load %arg1[%c0_1, %c0_2] : memref<48x32xf32, #tpu.memory_space<vmem>>, vector<48x32xf32>
    %cst = arith.constant dense<0.000000e+00> : vector<32x32xf32>
    %2 = tpu.matmul %0, %1, %cst {dimension_numbers = #tpu.dot_dimension_numbers<[1], [0], [0], [1], [0, 0, 1, 1], [], []>} : vector<32x48xf32>, vector<48x32xf32>, vector<32x32xf32> -> vector<32x32xf32>
    %c0_3 = arith.constant 0 : index
    %c0_4 = arith.constant 0 : index
    %3 = vector.load %arg2[%c0_3, %c0_4] : memref<1x32xf32, #tpu.memory_space<vmem>>, vector<1x32xf32>
    %4 = vector.broadcast %3 : vector<1x32xf32> to vector<32x32xf32>
    %5 = arith.addf %2, %4 : vector<32x32xf32>
    %c0_5 = arith.constant 0 : index
    %c0_6 = arith.constant 0 : index
    %6 = vector.load %arg3[%c0_5, %c0_6] : memref<32x32xf32, #tpu.memory_space<vmem>>, vector<32x32xf32>
    tpu.vector_store %arg3[%c0_5, %c0_6], %5 {strides = array<i32>} : memref<32x32xf32, #tpu.memory_space<vmem>>, vector<32x32xf32>,
    return
  }
}

module attributes {stable_mosaic.version = 11 : i64} {
  func.func @_encdec_kernel(%arg0: memref<8x32xf32, #tpu.memory_space<vmem>>, %arg1: memref<1x32xf32, #tpu.memory_space<vmem>>, %arg2: memref<1x32xf32, #tpu.memory_space<vmem>>, %arg3: memref<32x96xf32, #tpu.memory_space<vmem>>, %arg4: memref<1x96xf32, #tpu.memory_space<vmem>>, %arg5: memref<32x32xf32, #tpu.memory_space<vmem>>, %arg6: memref<1x32xf32, #tpu.memory_space<vmem>>, %arg7: memref<1x32xf32, #tpu.memory_space<vmem>>, %arg8: memref<1x32xf32, #tpu.memory_space<vmem>>, %arg9: memref<32x128xf32, #tpu.memory_space<vmem>>, %arg10: memref<1x128xf32, #tpu.memory_space<vmem>>, %arg11: memref<128x32xf32, #tpu.memory_space<vmem>>, %arg12: memref<1x32xf32, #tpu.memory_space<vmem>>, %arg13: memref<1x32xf32, #tpu.memory_space<vmem>>, %arg14: memref<1x32xf32, #tpu.memory_space<vmem>>, %arg15: memref<32x96xf32, #tpu.memory_space<vmem>>, %arg16: memref<1x96xf32, #tpu.memory_space<vmem>>, %arg17: memref<32x32xf32, #tpu.memory_space<vmem>>, %arg18: memref<1x32xf32, #tpu.memory_space<vmem>>, %arg19: memref<1x32xf32, #tpu.memory_space<vmem>>, %arg20: memref<1x32xf32, #tpu.memory_space<vmem>>, %arg21: memref<32x128xf32, #tpu.memory_space<vmem>>, %arg22: memref<1x128xf32, #tpu.memory_space<vmem>>, %arg23: memref<128x32xf32, #tpu.memory_space<vmem>>, %arg24: memref<1x32xf32, #tpu.memory_space<vmem>>, %arg25: memref<1x32xf32, #tpu.memory_space<vmem>>, %arg26: memref<1x32xf32, #tpu.memory_space<vmem>>, %arg27: memref<32x64xf32, #tpu.memory_space<vmem>>, %arg28: memref<1x64xf32, #tpu.memory_space<vmem>>, %arg29: memref<64x768xf32, #tpu.memory_space<vmem>>, %arg30: memref<1x768xf32, #tpu.memory_space<vmem>>, %arg31: memref<2x768xf32, #tpu.memory_space<vmem>>) attributes {dimension_semantics = [], scalar_prefetch = 0 : i64, scratch_operands = 0 : i64, tpu.core_type = #tpu.core_type<tc>} {
    %c0 = arith.constant 0 : index
    %c0_0 = arith.constant 0 : index
    %0 = vector.load %arg0[%c0, %c0_0] : memref<8x32xf32, #tpu.memory_space<vmem>>, vector<8x32xf32>
    %cst = arith.constant dense<0.000000e+00> : vector<8xf32>
    %1 = vector.multi_reduction <add>, %0, %cst [1] : vector<8x32xf32> to vector<8xf32>
    %2 = vector.shape_cast %1 : vector<8xf32> to vector<8x1xf32>
    %cst_1 = arith.constant 3.200000e+01 : f32
    %3 = vector.broadcast %cst_1 : f32 to vector<8x1xf32>
    %4 = arith.divf %2, %3 : vector<8x1xf32>
    %5 = vector.broadcast %4 : vector<8x1xf32> to vector<8x32xf32>
    %6 = arith.subf %0, %5 : vector<8x32xf32>
    %7 = arith.mulf %6, %6 : vector<8x32xf32>
    %cst_2 = arith.constant dense<0.000000e+00> : vector<8xf32>
    %8 = vector.multi_reduction <add>, %7, %cst_2 [1] : vector<8x32xf32> to vector<8xf32>
    %9 = vector.shape_cast %8 : vector<8xf32> to vector<8x1xf32>
    %cst_3 = arith.constant 3.200000e+01 : f32
    %10 = vector.broadcast %cst_3 : f32 to vector<8x1xf32>
    %11 = arith.divf %9, %10 : vector<8x1xf32>
    %12 = vector.broadcast %4 : vector<8x1xf32> to vector<8x32xf32>
    %13 = arith.subf %0, %12 : vector<8x32xf32>
    %cst_4 = arith.constant 9.99999997E-7 : f32
    %14 = vector.broadcast %cst_4 : f32 to vector<8x1xf32>
    %15 = arith.addf %11, %14 : vector<8x1xf32>
    %16 = math.rsqrt %15 : vector<8x1xf32>
    %17 = vector.broadcast %16 : vector<8x1xf32> to vector<8x32xf32>
    %18 = arith.mulf %13, %17 : vector<8x32xf32>
    %c0_5 = arith.constant 0 : index
    %c0_6 = arith.constant 0 : index
    %19 = vector.load %arg1[%c0_5, %c0_6] : memref<1x32xf32, #tpu.memory_space<vmem>>, vector<1x32xf32>
    %20 = vector.broadcast %19 : vector<1x32xf32> to vector<8x32xf32>
    %21 = arith.mulf %18, %20 : vector<8x32xf32>
    %c0_7 = arith.constant 0 : index
    %c0_8 = arith.constant 0 : index
    %22 = vector.load %arg2[%c0_7, %c0_8] : memref<1x32xf32, #tpu.memory_space<vmem>>, vector<1x32xf32>
    %23 = vector.broadcast %22 : vector<1x32xf32> to vector<8x32xf32>
    %24 = arith.addf %21, %23 : vector<8x32xf32>
    %c0_9 = arith.constant 0 : index
    %c0_10 = arith.constant 0 : index
    %25 = vector.load %arg3[%c0_9, %c0_10] : memref<32x96xf32, #tpu.memory_space<vmem>>, vector<32x96xf32>
    %cst_11 = arith.constant dense<0.000000e+00> : vector<8x96xf32>
    %26 = tpu.matmul %24, %25, %cst_11 {dimension_numbers = #tpu.dot_dimension_numbers<[1], [0], [0], [1], [0, 0, 1, 1], [], []>} : vector<8x32xf32>, vector<32x96xf32>, vector<8x96xf32> -> vector<8x96xf32>
    %c0_12 = arith.constant 0 : index
    %c0_13 = arith.constant 0 : index
    %27 = vector.load %arg4[%c0_12, %c0_13] : memref<1x96xf32, #tpu.memory_space<vmem>>, vector<1x96xf32>
    %28 = vector.broadcast %27 : vector<1x96xf32> to vector<8x96xf32>
    %29 = arith.addf %26, %28 : vector<8x96xf32>
    %30 = vector.extract_strided_slice %29 {offsets = [0, 0], sizes = [4, 96], strides = [1, 1]} : vector<8x96xf32> to vector<4x96xf32>
    %31 = vector.extract_strided_slice %30 {offsets = [0, 0], sizes = [4, 8], strides = [1, 1]} : vector<4x96xf32> to vector<4x8xf32>
    %32 = vector.extract_strided_slice %30 {offsets = [0, 32], sizes = [4, 8], strides = [1, 1]} : vector<4x96xf32> to vector<4x8xf32>
    %33 = vector.extract_strided_slice %30 {offsets = [0, 64], sizes = [4, 8], strides = [1, 1]} : vector<4x96xf32> to vector<4x8xf32>
    %34 = tpu.transpose %32, [1, 0] : vector<4x8xf32> -> vector<8x4xf32>
    %cst_14 = arith.constant dense<0.000000e+00> : vector<4x4xf32>
    %35 = tpu.matmul %31, %34, %cst_14 {dimension_numbers = #tpu.dot_dimension_numbers<[1], [0], [0], [1], [0, 0, 1, 1], [], []>} : vector<4x8xf32>, vector<8x4xf32>, vector<4x4xf32> -> vector<4x4xf32>
    %cst_15 = arith.constant 0.353553385 : f32
    %36 = vector.broadcast %cst_15 : f32 to vector<4x4xf32>
    %37 = arith.mulf %35, %36 : vector<4x4xf32>
    %cst_16 = arith.constant dense<0xFF800000> : vector<4xf32>
    %38 = vector.multi_reduction <maximumf>, %37, %cst_16 [1] : vector<4x4xf32> to vector<4xf32>
    %39 = vector.shape_cast %38 : vector<4xf32> to vector<4x1xf32>
    %40 = vector.broadcast %39 : vector<4x1xf32> to vector<4x4xf32>
    %41 = arith.subf %37, %40 : vector<4x4xf32>
    %42 = math.exp %41 : vector<4x4xf32>
    %cst_17 = arith.constant dense<0.000000e+00> : vector<4xf32>
    %43 = vector.multi_reduction <add>, %42, %cst_17 [1] : vector<4x4xf32> to vector<4xf32>
    %44 = vector.shape_cast %43 : vector<4xf32> to vector<4x1xf32>
    %45 = tpu.reciprocal %44 {approx = true} : vector<4x1xf32> -> vector<4x1xf32>
    %46 = vector.broadcast %45 : vector<4x1xf32> to vector<4x4xf32>
    %47 = arith.mulf %42, %46 : vector<4x4xf32>
    %cst_18 = arith.constant dense<0.000000e+00> : vector<4x8xf32>
    %48 = tpu.matmul %47, %33, %cst_18 {dimension_numbers = #tpu.dot_dimension_numbers<[1], [0], [0], [1], [0, 0, 1, 1], [], []>} : vector<4x4xf32>, vector<4x8xf32>, vector<4x8xf32> -> vector<4x8xf32>
    %49 = vector.extract_strided_slice %30 {offsets = [0, 8], sizes = [4, 8], strides = [1, 1]} : vector<4x96xf32> to vector<4x8xf32>
    %50 = vector.extract_strided_slice %30 {offsets = [0, 40], sizes = [4, 8], strides = [1, 1]} : vector<4x96xf32> to vector<4x8xf32>
    %51 = vector.extract_strided_slice %30 {offsets = [0, 72], sizes = [4, 8], strides = [1, 1]} : vector<4x96xf32> to vector<4x8xf32>
    %52 = tpu.transpose %50, [1, 0] : vector<4x8xf32> -> vector<8x4xf32>
    %cst_19 = arith.constant dense<0.000000e+00> : vector<4x4xf32>
    %53 = tpu.matmul %49, %52, %cst_19 {dimension_numbers = #tpu.dot_dimension_numbers<[1], [0], [0], [1], [0, 0, 1, 1], [], []>} : vector<4x8xf32>, vector<8x4xf32>, vector<4x4xf32> -> vector<4x4xf32>
    %cst_20 = arith.constant 0.353553385 : f32
    %54 = vector.broadcast %cst_20 : f32 to vector<4x4xf32>
    %55 = arith.mulf %53, %54 : vector<4x4xf32>
    %cst_21 = arith.constant dense<0xFF800000> : vector<4xf32>
    %56 = vector.multi_reduction <maximumf>, %55, %cst_21 [1] : vector<4x4xf32> to vector<4xf32>
    %57 = vector.shape_cast %56 : vector<4xf32> to vector<4x1xf32>
    %58 = vector.broadcast %57 : vector<4x1xf32> to vector<4x4xf32>
    %59 = arith.subf %55, %58 : vector<4x4xf32>
    %60 = math.exp %59 : vector<4x4xf32>
    %cst_22 = arith.constant dense<0.000000e+00> : vector<4xf32>
    %61 = vector.multi_reduction <add>, %60, %cst_22 [1] : vector<4x4xf32> to vector<4xf32>
    %62 = vector.shape_cast %61 : vector<4xf32> to vector<4x1xf32>
    %63 = tpu.reciprocal %62 {approx = true} : vector<4x1xf32> -> vector<4x1xf32>
    %64 = vector.broadcast %63 : vector<4x1xf32> to vector<4x4xf32>
    %65 = arith.mulf %60, %64 : vector<4x4xf32>
    %cst_23 = arith.constant dense<0.000000e+00> : vector<4x8xf32>
    %66 = tpu.matmul %65, %51, %cst_23 {dimension_numbers = #tpu.dot_dimension_numbers<[1], [0], [0], [1], [0, 0, 1, 1], [], []>} : vector<4x4xf32>, vector<4x8xf32>, vector<4x8xf32> -> vector<4x8xf32>
    %67 = vector.extract_strided_slice %30 {offsets = [0, 16], sizes = [4, 8], strides = [1, 1]} : vector<4x96xf32> to vector<4x8xf32>
    %68 = vector.extract_strided_slice %30 {offsets = [0, 48], sizes = [4, 8], strides = [1, 1]} : vector<4x96xf32> to vector<4x8xf32>
    %69 = vector.extract_strided_slice %30 {offsets = [0, 80], sizes = [4, 8], strides = [1, 1]} : vector<4x96xf32> to vector<4x8xf32>
    %70 = tpu.transpose %68, [1, 0] : vector<4x8xf32> -> vector<8x4xf32>
    %cst_24 = arith.constant dense<0.000000e+00> : vector<4x4xf32>
    %71 = tpu.matmul %67, %70, %cst_24 {dimension_numbers = #tpu.dot_dimension_numbers<[1], [0], [0], [1], [0, 0, 1, 1], [], []>} : vector<4x8xf32>, vector<8x4xf32>, vector<4x4xf32> -> vector<4x4xf32>
    %cst_25 = arith.constant 0.353553385 : f32
    %72 = vector.broadcast %cst_25 : f32 to vector<4x4xf32>
    %73 = arith.mulf %71, %72 : vector<4x4xf32>
    %cst_26 = arith.constant dense<0xFF800000> : vector<4xf32>
    %74 = vector.multi_reduction <maximumf>, %73, %cst_26 [1] : vector<4x4xf32> to vector<4xf32>
    %75 = vector.shape_cast %74 : vector<4xf32> to vector<4x1xf32>
    %76 = vector.broadcast %75 : vector<4x1xf32> to vector<4x4xf32>
    %77 = arith.subf %73, %76 : vector<4x4xf32>
    %78 = math.exp %77 : vector<4x4xf32>
    %cst_27 = arith.constant dense<0.000000e+00> : vector<4xf32>
    %79 = vector.multi_reduction <add>, %78, %cst_27 [1] : vector<4x4xf32> to vector<4xf32>
    %80 = vector.shape_cast %79 : vector<4xf32> to vector<4x1xf32>
    %81 = tpu.reciprocal %80 {approx = true} : vector<4x1xf32> -> vector<4x1xf32>
    %82 = vector.broadcast %81 : vector<4x1xf32> to vector<4x4xf32>
    %83 = arith.mulf %78, %82 : vector<4x4xf32>
    %cst_28 = arith.constant dense<0.000000e+00> : vector<4x8xf32>
    %84 = tpu.matmul %83, %69, %cst_28 {dimension_numbers = #tpu.dot_dimension_numbers<[1], [0], [0], [1], [0, 0, 1, 1], [], []>} : vector<4x4xf32>, vector<4x8xf32>, vector<4x8xf32> -> vector<4x8xf32>
    %85 = vector.extract_strided_slice %30 {offsets = [0, 24], sizes = [4, 8], strides = [1, 1]} : vector<4x96xf32> to vector<4x8xf32>
    %86 = vector.extract_strided_slice %30 {offsets = [0, 56], sizes = [4, 8], strides = [1, 1]} : vector<4x96xf32> to vector<4x8xf32>
    %87 = vector.extract_strided_slice %30 {offsets = [0, 88], sizes = [4, 8], strides = [1, 1]} : vector<4x96xf32> to vector<4x8xf32>
    %88 = tpu.transpose %86, [1, 0] : vector<4x8xf32> -> vector<8x4xf32>
    %cst_29 = arith.constant dense<0.000000e+00> : vector<4x4xf32>
    %89 = tpu.matmul %85, %88, %cst_29 {dimension_numbers = #tpu.dot_dimension_numbers<[1], [0], [0], [1], [0, 0, 1, 1], [], []>} : vector<4x8xf32>, vector<8x4xf32>, vector<4x4xf32> -> vector<4x4xf32>
    %cst_30 = arith.constant 0.353553385 : f32
    %90 = vector.broadcast %cst_30 : f32 to vector<4x4xf32>
    %91 = arith.mulf %89, %90 : vector<4x4xf32>
    %cst_31 = arith.constant dense<0xFF800000> : vector<4xf32>
    %92 = vector.multi_reduction <maximumf>, %91, %cst_31 [1] : vector<4x4xf32> to vector<4xf32>
    %93 = vector.shape_cast %92 : vector<4xf32> to vector<4x1xf32>
    %94 = vector.broadcast %93 : vector<4x1xf32> to vector<4x4xf32>
    %95 = arith.subf %91, %94 : vector<4x4xf32>
    %96 = math.exp %95 : vector<4x4xf32>
    %cst_32 = arith.constant dense<0.000000e+00> : vector<4xf32>
    %97 = vector.multi_reduction <add>, %96, %cst_32 [1] : vector<4x4xf32> to vector<4xf32>
    %98 = vector.shape_cast %97 : vector<4xf32> to vector<4x1xf32>
    %99 = tpu.reciprocal %98 {approx = true} : vector<4x1xf32> -> vector<4x1xf32>
    %100 = vector.broadcast %99 : vector<4x1xf32> to vector<4x4xf32>
    %101 = arith.mulf %96, %100 : vector<4x4xf32>
    %cst_33 = arith.constant dense<0.000000e+00> : vector<4x8xf32>
    %102 = tpu.matmul %101, %87, %cst_33 {dimension_numbers = #tpu.dot_dimension_numbers<[1], [0], [0], [1], [0, 0, 1, 1], [], []>} : vector<4x4xf32>, vector<4x8xf32>, vector<4x8xf32> -> vector<4x8xf32>
    %103 = tpu.concatenate %48, %66, %84, %102 in 1 : vector<4x8xf32>, vector<4x8xf32>, vector<4x8xf32>, vector<4x8xf32> -> vector<4x32xf32>
    %104 = vector.extract_strided_slice %29 {offsets = [4, 0], sizes = [4, 96], strides = [1, 1]} : vector<8x96xf32> to vector<4x96xf32>
    %105 = vector.extract_strided_slice %104 {offsets = [0, 0], sizes = [4, 8], strides = [1, 1]} : vector<4x96xf32> to vector<4x8xf32>
    %106 = vector.extract_strided_slice %104 {offsets = [0, 32], sizes = [4, 8], strides = [1, 1]} : vector<4x96xf32> to vector<4x8xf32>
    %107 = vector.extract_strided_slice %104 {offsets = [0, 64], sizes = [4, 8], strides = [1, 1]} : vector<4x96xf32> to vector<4x8xf32>
    %108 = tpu.transpose %106, [1, 0] : vector<4x8xf32> -> vector<8x4xf32>
    %cst_34 = arith.constant dense<0.000000e+00> : vector<4x4xf32>
    %109 = tpu.matmul %105, %108, %cst_34 {dimension_numbers = #tpu.dot_dimension_numbers<[1], [0], [0], [1], [0, 0, 1, 1], [], []>} : vector<4x8xf32>, vector<8x4xf32>, vector<4x4xf32> -> vector<4x4xf32>
    %cst_35 = arith.constant 0.353553385 : f32
    %110 = vector.broadcast %cst_35 : f32 to vector<4x4xf32>
    %111 = arith.mulf %109, %110 : vector<4x4xf32>
    %cst_36 = arith.constant dense<0xFF800000> : vector<4xf32>
    %112 = vector.multi_reduction <maximumf>, %111, %cst_36 [1] : vector<4x4xf32> to vector<4xf32>
    %113 = vector.shape_cast %112 : vector<4xf32> to vector<4x1xf32>
    %114 = vector.broadcast %113 : vector<4x1xf32> to vector<4x4xf32>
    %115 = arith.subf %111, %114 : vector<4x4xf32>
    %116 = math.exp %115 : vector<4x4xf32>
    %cst_37 = arith.constant dense<0.000000e+00> : vector<4xf32>
    %117 = vector.multi_reduction <add>, %116, %cst_37 [1] : vector<4x4xf32> to vector<4xf32>
    %118 = vector.shape_cast %117 : vector<4xf32> to vector<4x1xf32>
    %119 = tpu.reciprocal %118 {approx = true} : vector<4x1xf32> -> vector<4x1xf32>
    %120 = vector.broadcast %119 : vector<4x1xf32> to vector<4x4xf32>
    %121 = arith.mulf %116, %120 : vector<4x4xf32>
    %cst_38 = arith.constant dense<0.000000e+00> : vector<4x8xf32>
    %122 = tpu.matmul %121, %107, %cst_38 {dimension_numbers = #tpu.dot_dimension_numbers<[1], [0], [0], [1], [0, 0, 1, 1], [], []>} : vector<4x4xf32>, vector<4x8xf32>, vector<4x8xf32> -> vector<4x8xf32>
    %123 = vector.extract_strided_slice %104 {offsets = [0, 8], sizes = [4, 8], strides = [1, 1]} : vector<4x96xf32> to vector<4x8xf32>
    %124 = vector.extract_strided_slice %104 {offsets = [0, 40], sizes = [4, 8], strides = [1, 1]} : vector<4x96xf32> to vector<4x8xf32>
    %125 = vector.extract_strided_slice %104 {offsets = [0, 72], sizes = [4, 8], strides = [1, 1]} : vector<4x96xf32> to vector<4x8xf32>
    %126 = tpu.transpose %124, [1, 0] : vector<4x8xf32> -> vector<8x4xf32>
    %cst_39 = arith.constant dense<0.000000e+00> : vector<4x4xf32>
    %127 = tpu.matmul %123, %126, %cst_39 {dimension_numbers = #tpu.dot_dimension_numbers<[1], [0], [0], [1], [0, 0, 1, 1], [], []>} : vector<4x8xf32>, vector<8x4xf32>, vector<4x4xf32> -> vector<4x4xf32>
    %cst_40 = arith.constant 0.353553385 : f32
    %128 = vector.broadcast %cst_40 : f32 to vector<4x4xf32>
    %129 = arith.mulf %127, %128 : vector<4x4xf32>
    %cst_41 = arith.constant dense<0xFF800000> : vector<4xf32>
    %130 = vector.multi_reduction <maximumf>, %129, %cst_41 [1] : vector<4x4xf32> to vector<4xf32>
    %131 = vector.shape_cast %130 : vector<4xf32> to vector<4x1xf32>
    %132 = vector.broadcast %131 : vector<4x1xf32> to vector<4x4xf32>
    %133 = arith.subf %129, %132 : vector<4x4xf32>
    %134 = math.exp %133 : vector<4x4xf32>
    %cst_42 = arith.constant dense<0.000000e+00> : vector<4xf32>
    %135 = vector.multi_reduction <add>, %134, %cst_42 [1] : vector<4x4xf32> to vector<4xf32>
    %136 = vector.shape_cast %135 : vector<4xf32> to vector<4x1xf32>
    %137 = tpu.reciprocal %136 {approx = true} : vector<4x1xf32> -> vector<4x1xf32>
    %138 = vector.broadcast %137 : vector<4x1xf32> to vector<4x4xf32>
    %139 = arith.mulf %134, %138 : vector<4x4xf32>
    %cst_43 = arith.constant dense<0.000000e+00> : vector<4x8xf32>
    %140 = tpu.matmul %139, %125, %cst_43 {dimension_numbers = #tpu.dot_dimension_numbers<[1], [0], [0], [1], [0, 0, 1, 1], [], []>} : vector<4x4xf32>, vector<4x8xf32>, vector<4x8xf32> -> vector<4x8xf32>
    %141 = vector.extract_strided_slice %104 {offsets = [0, 16], sizes = [4, 8], strides = [1, 1]} : vector<4x96xf32> to vector<4x8xf32>
    %142 = vector.extract_strided_slice %104 {offsets = [0, 48], sizes = [4, 8], strides = [1, 1]} : vector<4x96xf32> to vector<4x8xf32>
    %143 = vector.extract_strided_slice %104 {offsets = [0, 80], sizes = [4, 8], strides = [1, 1]} : vector<4x96xf32> to vector<4x8xf32>
    %144 = tpu.transpose %142, [1, 0] : vector<4x8xf32> -> vector<8x4xf32>
    %cst_44 = arith.constant dense<0.000000e+00> : vector<4x4xf32>
    %145 = tpu.matmul %141, %144, %cst_44 {dimension_numbers = #tpu.dot_dimension_numbers<[1], [0], [0], [1], [0, 0, 1, 1], [], []>} : vector<4x8xf32>, vector<8x4xf32>, vector<4x4xf32> -> vector<4x4xf32>
    %cst_45 = arith.constant 0.353553385 : f32
    %146 = vector.broadcast %cst_45 : f32 to vector<4x4xf32>
    %147 = arith.mulf %145, %146 : vector<4x4xf32>
    %cst_46 = arith.constant dense<0xFF800000> : vector<4xf32>
    %148 = vector.multi_reduction <maximumf>, %147, %cst_46 [1] : vector<4x4xf32> to vector<4xf32>
    %149 = vector.shape_cast %148 : vector<4xf32> to vector<4x1xf32>
    %150 = vector.broadcast %149 : vector<4x1xf32> to vector<4x4xf32>
    %151 = arith.subf %147, %150 : vector<4x4xf32>
    %152 = math.exp %151 : vector<4x4xf32>
    %cst_47 = arith.constant dense<0.000000e+00> : vector<4xf32>
    %153 = vector.multi_reduction <add>, %152, %cst_47 [1] : vector<4x4xf32> to vector<4xf32>
    %154 = vector.shape_cast %153 : vector<4xf32> to vector<4x1xf32>
    %155 = tpu.reciprocal %154 {approx = true} : vector<4x1xf32> -> vector<4x1xf32>
    %156 = vector.broadcast %155 : vector<4x1xf32> to vector<4x4xf32>
    %157 = arith.mulf %152, %156 : vector<4x4xf32>
    %cst_48 = arith.constant dense<0.000000e+00> : vector<4x8xf32>
    %158 = tpu.matmul %157, %143, %cst_48 {dimension_numbers = #tpu.dot_dimension_numbers<[1], [0], [0], [1], [0, 0, 1, 1], [], []>} : vector<4x4xf32>, vector<4x8xf32>, vector<4x8xf32> -> vector<4x8xf32>
    %159 = vector.extract_strided_slice %104 {offsets = [0, 24], sizes = [4, 8], strides = [1, 1]} : vector<4x96xf32> to vector<4x8xf32>
    %160 = vector.extract_strided_slice %104 {offsets = [0, 56], sizes = [4, 8], strides = [1, 1]} : vector<4x96xf32> to vector<4x8xf32>
    %161 = vector.extract_strided_slice %104 {offsets = [0, 88], sizes = [4, 8], strides = [1, 1]} : vector<4x96xf32> to vector<4x8xf32>
    %162 = tpu.transpose %160, [1, 0] : vector<4x8xf32> -> vector<8x4xf32>
    %cst_49 = arith.constant dense<0.000000e+00> : vector<4x4xf32>
    %163 = tpu.matmul %159, %162, %cst_49 {dimension_numbers = #tpu.dot_dimension_numbers<[1], [0], [0], [1], [0, 0, 1, 1], [], []>} : vector<4x8xf32>, vector<8x4xf32>, vector<4x4xf32> -> vector<4x4xf32>
    %cst_50 = arith.constant 0.353553385 : f32
    %164 = vector.broadcast %cst_50 : f32 to vector<4x4xf32>
    %165 = arith.mulf %163, %164 : vector<4x4xf32>
    %cst_51 = arith.constant dense<0xFF800000> : vector<4xf32>
    %166 = vector.multi_reduction <maximumf>, %165, %cst_51 [1] : vector<4x4xf32> to vector<4xf32>
    %167 = vector.shape_cast %166 : vector<4xf32> to vector<4x1xf32>
    %168 = vector.broadcast %167 : vector<4x1xf32> to vector<4x4xf32>
    %169 = arith.subf %165, %168 : vector<4x4xf32>
    %170 = math.exp %169 : vector<4x4xf32>
    %cst_52 = arith.constant dense<0.000000e+00> : vector<4xf32>
    %171 = vector.multi_reduction <add>, %170, %cst_52 [1] : vector<4x4xf32> to vector<4xf32>
    %172 = vector.shape_cast %171 : vector<4xf32> to vector<4x1xf32>
    %173 = tpu.reciprocal %172 {approx = true} : vector<4x1xf32> -> vector<4x1xf32>
    %174 = vector.broadcast %173 : vector<4x1xf32> to vector<4x4xf32>
    %175 = arith.mulf %170, %174 : vector<4x4xf32>
    %cst_53 = arith.constant dense<0.000000e+00> : vector<4x8xf32>
    %176 = tpu.matmul %175, %161, %cst_53 {dimension_numbers = #tpu.dot_dimension_numbers<[1], [0], [0], [1], [0, 0, 1, 1], [], []>} : vector<4x4xf32>, vector<4x8xf32>, vector<4x8xf32> -> vector<4x8xf32>
    %177 = tpu.concatenate %122, %140, %158, %176 in 1 : vector<4x8xf32>, vector<4x8xf32>, vector<4x8xf32>, vector<4x8xf32> -> vector<4x32xf32>
    %178 = tpu.concatenate %103, %177 in 0 : vector<4x32xf32>, vector<4x32xf32> -> vector<8x32xf32>
    %c0_54 = arith.constant 0 : index
    %c0_55 = arith.constant 0 : index
    %179 = vector.load %arg5[%c0_54, %c0_55] : memref<32x32xf32, #tpu.memory_space<vmem>>, vector<32x32xf32>
    %cst_56 = arith.constant dense<0.000000e+00> : vector<8x32xf32>
    %180 = tpu.matmul %178, %179, %cst_56 {dimension_numbers = #tpu.dot_dimension_numbers<[1], [0], [0], [1], [0, 0, 1, 1], [], []>} : vector<8x32xf32>, vector<32x32xf32>, vector<8x32xf32> -> vector<8x32xf32>
    %c0_57 = arith.constant 0 : index
    %c0_58 = arith.constant 0 : index
    %181 = vector.load %arg6[%c0_57, %c0_58] : memref<1x32xf32, #tpu.memory_space<vmem>>, vector<1x32xf32>
    %182 = vector.broadcast %181 : vector<1x32xf32> to vector<8x32xf32>
    %183 = arith.addf %180, %182 : vector<8x32xf32>
    %184 = arith.addf %0, %183 : vector<8x32xf32>
    %cst_59 = arith.constant dense<0.000000e+00> : vector<8xf32>
    %185 = vector.multi_reduction <add>, %184, %cst_59 [1] : vector<8x32xf32> to vector<8xf32>
    %186 = vector.shape_cast %185 : vector<8xf32> to vector<8x1xf32>
    %cst_60 = arith.constant 3.200000e+01 : f32
    %187 = vector.broadcast %cst_60 : f32 to vector<8x1xf32>
    %188 = arith.divf %186, %187 : vector<8x1xf32>
    %189 = vector.broadcast %188 : vector<8x1xf32> to vector<8x32xf32>
    %190 = arith.subf %184, %189 : vector<8x32xf32>
    %191 = arith.mulf %190, %190 : vector<8x32xf32>
    %cst_61 = arith.constant dense<0.000000e+00> : vector<8xf32>
    %192 = vector.multi_reduction <add>, %191, %cst_61 [1] : vector<8x32xf32> to vector<8xf32>
    %193 = vector.shape_cast %192 : vector<8xf32> to vector<8x1xf32>
    %cst_62 = arith.constant 3.200000e+01 : f32
    %194 = vector.broadcast %cst_62 : f32 to vector<8x1xf32>
    %195 = arith.divf %193, %194 : vector<8x1xf32>
    %196 = vector.broadcast %188 : vector<8x1xf32> to vector<8x32xf32>
    %197 = arith.subf %184, %196 : vector<8x32xf32>
    %cst_63 = arith.constant 9.99999997E-7 : f32
    %198 = vector.broadcast %cst_63 : f32 to vector<8x1xf32>
    %199 = arith.addf %195, %198 : vector<8x1xf32>
    %200 = math.rsqrt %199 : vector<8x1xf32>
    %201 = vector.broadcast %200 : vector<8x1xf32> to vector<8x32xf32>
    %202 = arith.mulf %197, %201 : vector<8x32xf32>
    %c0_64 = arith.constant 0 : index
    %c0_65 = arith.constant 0 : index
    %203 = vector.load %arg7[%c0_64, %c0_65] : memref<1x32xf32, #tpu.memory_space<vmem>>, vector<1x32xf32>
    %204 = vector.broadcast %203 : vector<1x32xf32> to vector<8x32xf32>
    %205 = arith.mulf %202, %204 : vector<8x32xf32>
    %c0_66 = arith.constant 0 : index
    %c0_67 = arith.constant 0 : index
    %206 = vector.load %arg8[%c0_66, %c0_67] : memref<1x32xf32, #tpu.memory_space<vmem>>, vector<1x32xf32>
    %207 = vector.broadcast %206 : vector<1x32xf32> to vector<8x32xf32>
    %208 = arith.addf %205, %207 : vector<8x32xf32>
    %c0_68 = arith.constant 0 : index
    %c0_69 = arith.constant 0 : index
    %209 = vector.load %arg9[%c0_68, %c0_69] : memref<32x128xf32, #tpu.memory_space<vmem>>, vector<32x128xf32>
    %cst_70 = arith.constant dense<0.000000e+00> : vector<8x128xf32>
    %210 = tpu.matmul %208, %209, %cst_70 {dimension_numbers = #tpu.dot_dimension_numbers<[1], [0], [0], [1], [0, 0, 1, 1], [], []>} : vector<8x32xf32>, vector<32x128xf32>, vector<8x128xf32> -> vector<8x128xf32>
    %c0_71 = arith.constant 0 : index
    %c0_72 = arith.constant 0 : index
    %211 = vector.load %arg10[%c0_71, %c0_72] : memref<1x128xf32, #tpu.memory_space<vmem>>, vector<1x128xf32>
    %212 = vector.broadcast %211 : vector<1x128xf32> to vector<8x128xf32>
    %213 = arith.addf %210, %212 : vector<8x128xf32>
    %214 = arith.mulf %213, %213 : vector<8x128xf32>
    %215 = arith.mulf %213, %214 : vector<8x128xf32>
    %cst_73 = arith.constant 4.471500e-02 : f32
    %216 = vector.broadcast %cst_73 : f32 to vector<8x128xf32>
    %217 = arith.mulf %216, %215 : vector<8x128xf32>
    %218 = arith.addf %213, %217 : vector<8x128xf32>
    %cst_74 = arith.constant 0.797884583 : f32
    %219 = vector.broadcast %cst_74 : f32 to vector<8x128xf32>
    %220 = arith.mulf %219, %218 : vector<8x128xf32>
    %221 = math.tanh %220 : vector<8x128xf32>
    %cst_75 = arith.constant 1.000000e+00 : f32
    %222 = vector.broadcast %cst_75 : f32 to vector<8x128xf32>
    %223 = arith.addf %222, %221 : vector<8x128xf32>
    %cst_76 = arith.constant 5.000000e-01 : f32
    %224 = vector.broadcast %cst_76 : f32 to vector<8x128xf32>
    %225 = arith.mulf %224, %223 : vector<8x128xf32>
    %226 = arith.mulf %213, %225 : vector<8x128xf32>
    %c0_77 = arith.constant 0 : index
    %c0_78 = arith.constant 0 : index
    %227 = vector.load %arg11[%c0_77, %c0_78] : memref<128x32xf32, #tpu.memory_space<vmem>>, vector<128x32xf32>
    %cst_79 = arith.constant dense<0.000000e+00> : vector<8x32xf32>
    %228 = tpu.matmul %226, %227, %cst_79 {dimension_numbers = #tpu.dot_dimension_numbers<[1], [0], [0], [1], [0, 0, 1, 1], [], []>} : vector<8x128xf32>, vector<128x32xf32>, vector<8x32xf32> -> vector<8x32xf32>
    %c0_80 = arith.constant 0 : index
    %c0_81 = arith.constant 0 : index
    %229 = vector.load %arg12[%c0_80, %c0_81] : memref<1x32xf32, #tpu.memory_space<vmem>>, vector<1x32xf32>
    %230 = vector.broadcast %229 : vector<1x32xf32> to vector<8x32xf32>
    %231 = arith.addf %228, %230 : vector<8x32xf32>
    %232 = arith.addf %184, %231 : vector<8x32xf32>
    %cst_82 = arith.constant dense<0.000000e+00> : vector<8xf32>
    %233 = vector.multi_reduction <add>, %232, %cst_82 [1] : vector<8x32xf32> to vector<8xf32>
    %234 = vector.shape_cast %233 : vector<8xf32> to vector<8x1xf32>
    %cst_83 = arith.constant 3.200000e+01 : f32
    %235 = vector.broadcast %cst_83 : f32 to vector<8x1xf32>
    %236 = arith.divf %234, %235 : vector<8x1xf32>
    %237 = vector.broadcast %236 : vector<8x1xf32> to vector<8x32xf32>
    %238 = arith.subf %232, %237 : vector<8x32xf32>
    %239 = arith.mulf %238, %238 : vector<8x32xf32>
    %cst_84 = arith.constant dense<0.000000e+00> : vector<8xf32>
    %240 = vector.multi_reduction <add>, %239, %cst_84 [1] : vector<8x32xf32> to vector<8xf32>
    %241 = vector.shape_cast %240 : vector<8xf32> to vector<8x1xf32>
    %cst_85 = arith.constant 3.200000e+01 : f32
    %242 = vector.broadcast %cst_85 : f32 to vector<8x1xf32>
    %243 = arith.divf %241, %242 : vector<8x1xf32>
    %244 = vector.broadcast %236 : vector<8x1xf32> to vector<8x32xf32>
    %245 = arith.subf %232, %244 : vector<8x32xf32>
    %cst_86 = arith.constant 9.99999997E-7 : f32
    %246 = vector.broadcast %cst_86 : f32 to vector<8x1xf32>
    %247 = arith.addf %243, %246 : vector<8x1xf32>
    %248 = math.rsqrt %247 : vector<8x1xf32>
    %249 = vector.broadcast %248 : vector<8x1xf32> to vector<8x32xf32>
    %250 = arith.mulf %245, %249 : vector<8x32xf32>
    %c0_87 = arith.constant 0 : index
    %c0_88 = arith.constant 0 : index
    %251 = vector.load %arg13[%c0_87, %c0_88] : memref<1x32xf32, #tpu.memory_space<vmem>>, vector<1x32xf32>
    %252 = vector.broadcast %251 : vector<1x32xf32> to vector<8x32xf32>
    %253 = arith.mulf %250, %252 : vector<8x32xf32>
    %c0_89 = arith.constant 0 : index
    %c0_90 = arith.constant 0 : index
    %254 = vector.load %arg14[%c0_89, %c0_90] : memref<1x32xf32, #tpu.memory_space<vmem>>, vector<1x32xf32>
    %255 = vector.broadcast %254 : vector<1x32xf32> to vector<8x32xf32>
    %256 = arith.addf %253, %255 : vector<8x32xf32>
    %c0_91 = arith.constant 0 : index
    %c0_92 = arith.constant 0 : index
    %257 = vector.load %arg15[%c0_91, %c0_92] : memref<32x96xf32, #tpu.memory_space<vmem>>, vector<32x96xf32>
    %cst_93 = arith.constant dense<0.000000e+00> : vector<8x96xf32>
    %258 = tpu.matmul %256, %257, %cst_93 {dimension_numbers = #tpu.dot_dimension_numbers<[1], [0], [0], [1], [0, 0, 1, 1], [], []>} : vector<8x32xf32>, vector<32x96xf32>, vector<8x96xf32> -> vector<8x96xf32>
    %c0_94 = arith.constant 0 : index
    %c0_95 = arith.constant 0 : index
    %259 = vector.load %arg16[%c0_94, %c0_95] : memref<1x96xf32, #tpu.memory_space<vmem>>, vector<1x96xf32>
    %260 = vector.broadcast %259 : vector<1x96xf32> to vector<8x96xf32>
    %261 = arith.addf %258, %260 : vector<8x96xf32>
    %262 = vector.extract_strided_slice %261 {offsets = [0, 0], sizes = [4, 96], strides = [1, 1]} : vector<8x96xf32> to vector<4x96xf32>
    %263 = vector.extract_strided_slice %262 {offsets = [0, 0], sizes = [4, 8], strides = [1, 1]} : vector<4x96xf32> to vector<4x8xf32>
    %264 = vector.extract_strided_slice %262 {offsets = [0, 32], sizes = [4, 8], strides = [1, 1]} : vector<4x96xf32> to vector<4x8xf32>
    %265 = vector.extract_strided_slice %262 {offsets = [0, 64], sizes = [4, 8], strides = [1, 1]} : vector<4x96xf32> to vector<4x8xf32>
    %266 = tpu.transpose %264, [1, 0] : vector<4x8xf32> -> vector<8x4xf32>
    %cst_96 = arith.constant dense<0.000000e+00> : vector<4x4xf32>
    %267 = tpu.matmul %263, %266, %cst_96 {dimension_numbers = #tpu.dot_dimension_numbers<[1], [0], [0], [1], [0, 0, 1, 1], [], []>} : vector<4x8xf32>, vector<8x4xf32>, vector<4x4xf32> -> vector<4x4xf32>
    %cst_97 = arith.constant 0.353553385 : f32
    %268 = vector.broadcast %cst_97 : f32 to vector<4x4xf32>
    %269 = arith.mulf %267, %268 : vector<4x4xf32>
    %cst_98 = arith.constant dense<0xFF800000> : vector<4xf32>
    %270 = vector.multi_reduction <maximumf>, %269, %cst_98 [1] : vector<4x4xf32> to vector<4xf32>
    %271 = vector.shape_cast %270 : vector<4xf32> to vector<4x1xf32>
    %272 = vector.broadcast %271 : vector<4x1xf32> to vector<4x4xf32>
    %273 = arith.subf %269, %272 : vector<4x4xf32>
    %274 = math.exp %273 : vector<4x4xf32>
    %cst_99 = arith.constant dense<0.000000e+00> : vector<4xf32>
    %275 = vector.multi_reduction <add>, %274, %cst_99 [1] : vector<4x4xf32> to vector<4xf32>
    %276 = vector.shape_cast %275 : vector<4xf32> to vector<4x1xf32>
    %277 = tpu.reciprocal %276 {approx = true} : vector<4x1xf32> -> vector<4x1xf32>
    %278 = vector.broadcast %277 : vector<4x1xf32> to vector<4x4xf32>
    %279 = arith.mulf %274, %278 : vector<4x4xf32>
    %cst_100 = arith.constant dense<0.000000e+00> : vector<4x8xf32>
    %280 = tpu.matmul %279, %265, %cst_100 {dimension_numbers = #tpu.dot_dimension_numbers<[1], [0], [0], [1], [0, 0, 1, 1], [], []>} : vector<4x4xf32>, vector<4x8xf32>, vector<4x8xf32> -> vector<4x8xf32>
    %281 = vector.extract_strided_slice %262 {offsets = [0, 8], sizes = [4, 8], strides = [1, 1]} : vector<4x96xf32> to vector<4x8xf32>
    %282 = vector.extract_strided_slice %262 {offsets = [0, 40], sizes = [4, 8], strides = [1, 1]} : vector<4x96xf32> to vector<4x8xf32>
    %283 = vector.extract_strided_slice %262 {offsets = [0, 72], sizes = [4, 8], strides = [1, 1]} : vector<4x96xf32> to vector<4x8xf32>
    %284 = tpu.transpose %282, [1, 0] : vector<4x8xf32> -> vector<8x4xf32>
    %cst_101 = arith.constant dense<0.000000e+00> : vector<4x4xf32>
    %285 = tpu.matmul %281, %284, %cst_101 {dimension_numbers = #tpu.dot_dimension_numbers<[1], [0], [0], [1], [0, 0, 1, 1], [], []>} : vector<4x8xf32>, vector<8x4xf32>, vector<4x4xf32> -> vector<4x4xf32>
    %cst_102 = arith.constant 0.353553385 : f32
    %286 = vector.broadcast %cst_102 : f32 to vector<4x4xf32>
    %287 = arith.mulf %285, %286 : vector<4x4xf32>
    %cst_103 = arith.constant dense<0xFF800000> : vector<4xf32>
    %288 = vector.multi_reduction <maximumf>, %287, %cst_103 [1] : vector<4x4xf32> to vector<4xf32>
    %289 = vector.shape_cast %288 : vector<4xf32> to vector<4x1xf32>
    %290 = vector.broadcast %289 : vector<4x1xf32> to vector<4x4xf32>
    %291 = arith.subf %287, %290 : vector<4x4xf32>
    %292 = math.exp %291 : vector<4x4xf32>
    %cst_104 = arith.constant dense<0.000000e+00> : vector<4xf32>
    %293 = vector.multi_reduction <add>, %292, %cst_104 [1] : vector<4x4xf32> to vector<4xf32>
    %294 = vector.shape_cast %293 : vector<4xf32> to vector<4x1xf32>
    %295 = tpu.reciprocal %294 {approx = true} : vector<4x1xf32> -> vector<4x1xf32>
    %296 = vector.broadcast %295 : vector<4x1xf32> to vector<4x4xf32>
    %297 = arith.mulf %292, %296 : vector<4x4xf32>
    %cst_105 = arith.constant dense<0.000000e+00> : vector<4x8xf32>
    %298 = tpu.matmul %297, %283, %cst_105 {dimension_numbers = #tpu.dot_dimension_numbers<[1], [0], [0], [1], [0, 0, 1, 1], [], []>} : vector<4x4xf32>, vector<4x8xf32>, vector<4x8xf32> -> vector<4x8xf32>
    %299 = vector.extract_strided_slice %262 {offsets = [0, 16], sizes = [4, 8], strides = [1, 1]} : vector<4x96xf32> to vector<4x8xf32>
    %300 = vector.extract_strided_slice %262 {offsets = [0, 48], sizes = [4, 8], strides = [1, 1]} : vector<4x96xf32> to vector<4x8xf32>
    %301 = vector.extract_strided_slice %262 {offsets = [0, 80], sizes = [4, 8], strides = [1, 1]} : vector<4x96xf32> to vector<4x8xf32>
    %302 = tpu.transpose %300, [1, 0] : vector<4x8xf32> -> vector<8x4xf32>
    %cst_106 = arith.constant dense<0.000000e+00> : vector<4x4xf32>
    %303 = tpu.matmul %299, %302, %cst_106 {dimension_numbers = #tpu.dot_dimension_numbers<[1], [0], [0], [1], [0, 0, 1, 1], [], []>} : vector<4x8xf32>, vector<8x4xf32>, vector<4x4xf32> -> vector<4x4xf32>
    %cst_107 = arith.constant 0.353553385 : f32
    %304 = vector.broadcast %cst_107 : f32 to vector<4x4xf32>
    %305 = arith.mulf %303, %304 : vector<4x4xf32>
    %cst_108 = arith.constant dense<0xFF800000> : vector<4xf32>
    %306 = vector.multi_reduction <maximumf>, %305, %cst_108 [1] : vector<4x4xf32> to vector<4xf32>
    %307 = vector.shape_cast %306 : vector<4xf32> to vector<4x1xf32>
    %308 = vector.broadcast %307 : vector<4x1xf32> to vector<4x4xf32>
    %309 = arith.subf %305, %308 : vector<4x4xf32>
    %310 = math.exp %309 : vector<4x4xf32>
    %cst_109 = arith.constant dense<0.000000e+00> : vector<4xf32>
    %311 = vector.multi_reduction <add>, %310, %cst_109 [1] : vector<4x4xf32> to vector<4xf32>
    %312 = vector.shape_cast %311 : vector<4xf32> to vector<4x1xf32>
    %313 = tpu.reciprocal %312 {approx = true} : vector<4x1xf32> -> vector<4x1xf32>
    %314 = vector.broadcast %313 : vector<4x1xf32> to vector<4x4xf32>
    %315 = arith.mulf %310, %314 : vector<4x4xf32>
    %cst_110 = arith.constant dense<0.000000e+00> : vector<4x8xf32>
    %316 = tpu.matmul %315, %301, %cst_110 {dimension_numbers = #tpu.dot_dimension_numbers<[1], [0], [0], [1], [0, 0, 1, 1], [], []>} : vector<4x4xf32>, vector<4x8xf32>, vector<4x8xf32> -> vector<4x8xf32>
    %317 = vector.extract_strided_slice %262 {offsets = [0, 24], sizes = [4, 8], strides = [1, 1]} : vector<4x96xf32> to vector<4x8xf32>
    %318 = vector.extract_strided_slice %262 {offsets = [0, 56], sizes = [4, 8], strides = [1, 1]} : vector<4x96xf32> to vector<4x8xf32>
    %319 = vector.extract_strided_slice %262 {offsets = [0, 88], sizes = [4, 8], strides = [1, 1]} : vector<4x96xf32> to vector<4x8xf32>
    %320 = tpu.transpose %318, [1, 0] : vector<4x8xf32> -> vector<8x4xf32>
    %cst_111 = arith.constant dense<0.000000e+00> : vector<4x4xf32>
    %321 = tpu.matmul %317, %320, %cst_111 {dimension_numbers = #tpu.dot_dimension_numbers<[1], [0], [0], [1], [0, 0, 1, 1], [], []>} : vector<4x8xf32>, vector<8x4xf32>, vector<4x4xf32> -> vector<4x4xf32>
    %cst_112 = arith.constant 0.353553385 : f32
    %322 = vector.broadcast %cst_112 : f32 to vector<4x4xf32>
    %323 = arith.mulf %321, %322 : vector<4x4xf32>
    %cst_113 = arith.constant dense<0xFF800000> : vector<4xf32>
    %324 = vector.multi_reduction <maximumf>, %323, %cst_113 [1] : vector<4x4xf32> to vector<4xf32>
    %325 = vector.shape_cast %324 : vector<4xf32> to vector<4x1xf32>
    %326 = vector.broadcast %325 : vector<4x1xf32> to vector<4x4xf32>
    %327 = arith.subf %323, %326 : vector<4x4xf32>
    %328 = math.exp %327 : vector<4x4xf32>
    %cst_114 = arith.constant dense<0.000000e+00> : vector<4xf32>
    %329 = vector.multi_reduction <add>, %328, %cst_114 [1] : vector<4x4xf32> to vector<4xf32>
    %330 = vector.shape_cast %329 : vector<4xf32> to vector<4x1xf32>
    %331 = tpu.reciprocal %330 {approx = true} : vector<4x1xf32> -> vector<4x1xf32>
    %332 = vector.broadcast %331 : vector<4x1xf32> to vector<4x4xf32>
    %333 = arith.mulf %328, %332 : vector<4x4xf32>
    %cst_115 = arith.constant dense<0.000000e+00> : vector<4x8xf32>
    %334 = tpu.matmul %333, %319, %cst_115 {dimension_numbers = #tpu.dot_dimension_numbers<[1], [0], [0], [1], [0, 0, 1, 1], [], []>} : vector<4x4xf32>, vector<4x8xf32>, vector<4x8xf32> -> vector<4x8xf32>
    %335 = tpu.concatenate %280, %298, %316, %334 in 1 : vector<4x8xf32>, vector<4x8xf32>, vector<4x8xf32>, vector<4x8xf32> -> vector<4x32xf32>
    %336 = vector.extract_strided_slice %261 {offsets = [4, 0], sizes = [4, 96], strides = [1, 1]} : vector<8x96xf32> to vector<4x96xf32>
    %337 = vector.extract_strided_slice %336 {offsets = [0, 0], sizes = [4, 8], strides = [1, 1]} : vector<4x96xf32> to vector<4x8xf32>
    %338 = vector.extract_strided_slice %336 {offsets = [0, 32], sizes = [4, 8], strides = [1, 1]} : vector<4x96xf32> to vector<4x8xf32>
    %339 = vector.extract_strided_slice %336 {offsets = [0, 64], sizes = [4, 8], strides = [1, 1]} : vector<4x96xf32> to vector<4x8xf32>
    %340 = tpu.transpose %338, [1, 0] : vector<4x8xf32> -> vector<8x4xf32>
    %cst_116 = arith.constant dense<0.000000e+00> : vector<4x4xf32>
    %341 = tpu.matmul %337, %340, %cst_116 {dimension_numbers = #tpu.dot_dimension_numbers<[1], [0], [0], [1], [0, 0, 1, 1], [], []>} : vector<4x8xf32>, vector<8x4xf32>, vector<4x4xf32> -> vector<4x4xf32>
    %cst_117 = arith.constant 0.353553385 : f32
    %342 = vector.broadcast %cst_117 : f32 to vector<4x4xf32>
    %343 = arith.mulf %341, %342 : vector<4x4xf32>
    %cst_118 = arith.constant dense<0xFF800000> : vector<4xf32>
    %344 = vector.multi_reduction <maximumf>, %343, %cst_118 [1] : vector<4x4xf32> to vector<4xf32>
    %345 = vector.shape_cast %344 : vector<4xf32> to vector<4x1xf32>
    %346 = vector.broadcast %345 : vector<4x1xf32> to vector<4x4xf32>
    %347 = arith.subf %343, %346 : vector<4x4xf32>
    %348 = math.exp %347 : vector<4x4xf32>
    %cst_119 = arith.constant dense<0.000000e+00> : vector<4xf32>
    %349 = vector.multi_reduction <add>, %348, %cst_119 [1] : vector<4x4xf32> to vector<4xf32>
    %350 = vector.shape_cast %349 : vector<4xf32> to vector<4x1xf32>
    %351 = tpu.reciprocal %350 {approx = true} : vector<4x1xf32> -> vector<4x1xf32>
    %352 = vector.broadcast %351 : vector<4x1xf32> to vector<4x4xf32>
    %353 = arith.mulf %348, %352 : vector<4x4xf32>
    %cst_120 = arith.constant dense<0.000000e+00> : vector<4x8xf32>
    %354 = tpu.matmul %353, %339, %cst_120 {dimension_numbers = #tpu.dot_dimension_numbers<[1], [0], [0], [1], [0, 0, 1, 1], [], []>} : vector<4x4xf32>, vector<4x8xf32>, vector<4x8xf32> -> vector<4x8xf32>
    %355 = vector.extract_strided_slice %336 {offsets = [0, 8], sizes = [4, 8], strides = [1, 1]} : vector<4x96xf32> to vector<4x8xf32>
    %356 = vector.extract_strided_slice %336 {offsets = [0, 40], sizes = [4, 8], strides = [1, 1]} : vector<4x96xf32> to vector<4x8xf32>
    %357 = vector.extract_strided_slice %336 {offsets = [0, 72], sizes = [4, 8], strides = [1, 1]} : vector<4x96xf32> to vector<4x8xf32>
    %358 = tpu.transpose %356, [1, 0] : vector<4x8xf32> -> vector<8x4xf32>
    %cst_121 = arith.constant dense<0.000000e+00> : vector<4x4xf32>
    %359 = tpu.matmul %355, %358, %cst_121 {dimension_numbers = #tpu.dot_dimension_numbers<[1], [0], [0], [1], [0, 0, 1, 1], [], []>} : vector<4x8xf32>, vector<8x4xf32>, vector<4x4xf32> -> vector<4x4xf32>
    %cst_122 = arith.constant 0.353553385 : f32
    %360 = vector.broadcast %cst_122 : f32 to vector<4x4xf32>
    %361 = arith.mulf %359, %360 : vector<4x4xf32>
    %cst_123 = arith.constant dense<0xFF800000> : vector<4xf32>
    %362 = vector.multi_reduction <maximumf>, %361, %cst_123 [1] : vector<4x4xf32> to vector<4xf32>
    %363 = vector.shape_cast %362 : vector<4xf32> to vector<4x1xf32>
    %364 = vector.broadcast %363 : vector<4x1xf32> to vector<4x4xf32>
    %365 = arith.subf %361, %364 : vector<4x4xf32>
    %366 = math.exp %365 : vector<4x4xf32>
    %cst_124 = arith.constant dense<0.000000e+00> : vector<4xf32>
    %367 = vector.multi_reduction <add>, %366, %cst_124 [1] : vector<4x4xf32> to vector<4xf32>
    %368 = vector.shape_cast %367 : vector<4xf32> to vector<4x1xf32>
    %369 = tpu.reciprocal %368 {approx = true} : vector<4x1xf32> -> vector<4x1xf32>
    %370 = vector.broadcast %369 : vector<4x1xf32> to vector<4x4xf32>
    %371 = arith.mulf %366, %370 : vector<4x4xf32>
    %cst_125 = arith.constant dense<0.000000e+00> : vector<4x8xf32>
    %372 = tpu.matmul %371, %357, %cst_125 {dimension_numbers = #tpu.dot_dimension_numbers<[1], [0], [0], [1], [0, 0, 1, 1], [], []>} : vector<4x4xf32>, vector<4x8xf32>, vector<4x8xf32> -> vector<4x8xf32>
    %373 = vector.extract_strided_slice %336 {offsets = [0, 16], sizes = [4, 8], strides = [1, 1]} : vector<4x96xf32> to vector<4x8xf32>
    %374 = vector.extract_strided_slice %336 {offsets = [0, 48], sizes = [4, 8], strides = [1, 1]} : vector<4x96xf32> to vector<4x8xf32>
    %375 = vector.extract_strided_slice %336 {offsets = [0, 80], sizes = [4, 8], strides = [1, 1]} : vector<4x96xf32> to vector<4x8xf32>
    %376 = tpu.transpose %374, [1, 0] : vector<4x8xf32> -> vector<8x4xf32>
    %cst_126 = arith.constant dense<0.000000e+00> : vector<4x4xf32>
    %377 = tpu.matmul %373, %376, %cst_126 {dimension_numbers = #tpu.dot_dimension_numbers<[1], [0], [0], [1], [0, 0, 1, 1], [], []>} : vector<4x8xf32>, vector<8x4xf32>, vector<4x4xf32> -> vector<4x4xf32>
    %cst_127 = arith.constant 0.353553385 : f32
    %378 = vector.broadcast %cst_127 : f32 to vector<4x4xf32>
    %379 = arith.mulf %377, %378 : vector<4x4xf32>
    %cst_128 = arith.constant dense<0xFF800000> : vector<4xf32>
    %380 = vector.multi_reduction <maximumf>, %379, %cst_128 [1] : vector<4x4xf32> to vector<4xf32>
    %381 = vector.shape_cast %380 : vector<4xf32> to vector<4x1xf32>
    %382 = vector.broadcast %381 : vector<4x1xf32> to vector<4x4xf32>
    %383 = arith.subf %379, %382 : vector<4x4xf32>
    %384 = math.exp %383 : vector<4x4xf32>
    %cst_129 = arith.constant dense<0.000000e+00> : vector<4xf32>
    %385 = vector.multi_reduction <add>, %384, %cst_129 [1] : vector<4x4xf32> to vector<4xf32>
    %386 = vector.shape_cast %385 : vector<4xf32> to vector<4x1xf32>
    %387 = tpu.reciprocal %386 {approx = true} : vector<4x1xf32> -> vector<4x1xf32>
    %388 = vector.broadcast %387 : vector<4x1xf32> to vector<4x4xf32>
    %389 = arith.mulf %384, %388 : vector<4x4xf32>
    %cst_130 = arith.constant dense<0.000000e+00> : vector<4x8xf32>
    %390 = tpu.matmul %389, %375, %cst_130 {dimension_numbers = #tpu.dot_dimension_numbers<[1], [0], [0], [1], [0, 0, 1, 1], [], []>} : vector<4x4xf32>, vector<4x8xf32>, vector<4x8xf32> -> vector<4x8xf32>
    %391 = vector.extract_strided_slice %336 {offsets = [0, 24], sizes = [4, 8], strides = [1, 1]} : vector<4x96xf32> to vector<4x8xf32>
    %392 = vector.extract_strided_slice %336 {offsets = [0, 56], sizes = [4, 8], strides = [1, 1]} : vector<4x96xf32> to vector<4x8xf32>
    %393 = vector.extract_strided_slice %336 {offsets = [0, 88], sizes = [4, 8], strides = [1, 1]} : vector<4x96xf32> to vector<4x8xf32>
    %394 = tpu.transpose %392, [1, 0] : vector<4x8xf32> -> vector<8x4xf32>
    %cst_131 = arith.constant dense<0.000000e+00> : vector<4x4xf32>
    %395 = tpu.matmul %391, %394, %cst_131 {dimension_numbers = #tpu.dot_dimension_numbers<[1], [0], [0], [1], [0, 0, 1, 1], [], []>} : vector<4x8xf32>, vector<8x4xf32>, vector<4x4xf32> -> vector<4x4xf32>
    %cst_132 = arith.constant 0.353553385 : f32
    %396 = vector.broadcast %cst_132 : f32 to vector<4x4xf32>
    %397 = arith.mulf %395, %396 : vector<4x4xf32>
    %cst_133 = arith.constant dense<0xFF800000> : vector<4xf32>
    %398 = vector.multi_reduction <maximumf>, %397, %cst_133 [1] : vector<4x4xf32> to vector<4xf32>
    %399 = vector.shape_cast %398 : vector<4xf32> to vector<4x1xf32>
    %400 = vector.broadcast %399 : vector<4x1xf32> to vector<4x4xf32>
    %401 = arith.subf %397, %400 : vector<4x4xf32>
    %402 = math.exp %401 : vector<4x4xf32>
    %cst_134 = arith.constant dense<0.000000e+00> : vector<4xf32>
    %403 = vector.multi_reduction <add>, %402, %cst_134 [1] : vector<4x4xf32> to vector<4xf32>
    %404 = vector.shape_cast %403 : vector<4xf32> to vector<4x1xf32>
    %405 = tpu.reciprocal %404 {approx = true} : vector<4x1xf32> -> vector<4x1xf32>
    %406 = vector.broadcast %405 : vector<4x1xf32> to vector<4x4xf32>
    %407 = arith.mulf %402, %406 : vector<4x4xf32>
    %cst_135 = arith.constant dense<0.000000e+00> : vector<4x8xf32>
    %408 = tpu.matmul %407, %393, %cst_135 {dimension_numbers = #tpu.dot_dimension_numbers<[1], [0], [0], [1], [0, 0, 1, 1], [], []>} : vector<4x4xf32>, vector<4x8xf32>, vector<4x8xf32> -> vector<4x8xf32>
    %409 = tpu.concatenate %354, %372, %390, %408 in 1 : vector<4x8xf32>, vector<4x8xf32>, vector<4x8xf32>, vector<4x8xf32> -> vector<4x32xf32>
    %410 = tpu.concatenate %335, %409 in 0 : vector<4x32xf32>, vector<4x32xf32> -> vector<8x32xf32>
    %c0_136 = arith.constant 0 : index
    %c0_137 = arith.constant 0 : index
    %411 = vector.load %arg17[%c0_136, %c0_137] : memref<32x32xf32, #tpu.memory_space<vmem>>, vector<32x32xf32>
    %cst_138 = arith.constant dense<0.000000e+00> : vector<8x32xf32>
    %412 = tpu.matmul %410, %411, %cst_138 {dimension_numbers = #tpu.dot_dimension_numbers<[1], [0], [0], [1], [0, 0, 1, 1], [], []>} : vector<8x32xf32>, vector<32x32xf32>, vector<8x32xf32> -> vector<8x32xf32>
    %c0_139 = arith.constant 0 : index
    %c0_140 = arith.constant 0 : index
    %413 = vector.load %arg18[%c0_139, %c0_140] : memref<1x32xf32, #tpu.memory_space<vmem>>, vector<1x32xf32>
    %414 = vector.broadcast %413 : vector<1x32xf32> to vector<8x32xf32>
    %415 = arith.addf %412, %414 : vector<8x32xf32>
    %416 = arith.addf %232, %415 : vector<8x32xf32>
    %cst_141 = arith.constant dense<0.000000e+00> : vector<8xf32>
    %417 = vector.multi_reduction <add>, %416, %cst_141 [1] : vector<8x32xf32> to vector<8xf32>
    %418 = vector.shape_cast %417 : vector<8xf32> to vector<8x1xf32>
    %cst_142 = arith.constant 3.200000e+01 : f32
    %419 = vector.broadcast %cst_142 : f32 to vector<8x1xf32>
    %420 = arith.divf %418, %419 : vector<8x1xf32>
    %421 = vector.broadcast %420 : vector<8x1xf32> to vector<8x32xf32>
    %422 = arith.subf %416, %421 : vector<8x32xf32>
    %423 = arith.mulf %422, %422 : vector<8x32xf32>
    %cst_143 = arith.constant dense<0.000000e+00> : vector<8xf32>
    %424 = vector.multi_reduction <add>, %423, %cst_143 [1] : vector<8x32xf32> to vector<8xf32>
    %425 = vector.shape_cast %424 : vector<8xf32> to vector<8x1xf32>
    %cst_144 = arith.constant 3.200000e+01 : f32
    %426 = vector.broadcast %cst_144 : f32 to vector<8x1xf32>
    %427 = arith.divf %425, %426 : vector<8x1xf32>
    %428 = vector.broadcast %420 : vector<8x1xf32> to vector<8x32xf32>
    %429 = arith.subf %416, %428 : vector<8x32xf32>
    %cst_145 = arith.constant 9.99999997E-7 : f32
    %430 = vector.broadcast %cst_145 : f32 to vector<8x1xf32>
    %431 = arith.addf %427, %430 : vector<8x1xf32>
    %432 = math.rsqrt %431 : vector<8x1xf32>
    %433 = vector.broadcast %432 : vector<8x1xf32> to vector<8x32xf32>
    %434 = arith.mulf %429, %433 : vector<8x32xf32>
    %c0_146 = arith.constant 0 : index
    %c0_147 = arith.constant 0 : index
    %435 = vector.load %arg19[%c0_146, %c0_147] : memref<1x32xf32, #tpu.memory_space<vmem>>, vector<1x32xf32>
    %436 = vector.broadcast %435 : vector<1x32xf32> to vector<8x32xf32>
    %437 = arith.mulf %434, %436 : vector<8x32xf32>
    %c0_148 = arith.constant 0 : index
    %c0_149 = arith.constant 0 : index
    %438 = vector.load %arg20[%c0_148, %c0_149] : memref<1x32xf32, #tpu.memory_space<vmem>>, vector<1x32xf32>
    %439 = vector.broadcast %438 : vector<1x32xf32> to vector<8x32xf32>
    %440 = arith.addf %437, %439 : vector<8x32xf32>
    %c0_150 = arith.constant 0 : index
    %c0_151 = arith.constant 0 : index
    %441 = vector.load %arg21[%c0_150, %c0_151] : memref<32x128xf32, #tpu.memory_space<vmem>>, vector<32x128xf32>
    %cst_152 = arith.constant dense<0.000000e+00> : vector<8x128xf32>
    %442 = tpu.matmul %440, %441, %cst_152 {dimension_numbers = #tpu.dot_dimension_numbers<[1], [0], [0], [1], [0, 0, 1, 1], [], []>} : vector<8x32xf32>, vector<32x128xf32>, vector<8x128xf32> -> vector<8x128xf32>
    %c0_153 = arith.constant 0 : index
    %c0_154 = arith.constant 0 : index
    %443 = vector.load %arg22[%c0_153, %c0_154] : memref<1x128xf32, #tpu.memory_space<vmem>>, vector<1x128xf32>
    %444 = vector.broadcast %443 : vector<1x128xf32> to vector<8x128xf32>
    %445 = arith.addf %442, %444 : vector<8x128xf32>
    %446 = arith.mulf %445, %445 : vector<8x128xf32>
    %447 = arith.mulf %445, %446 : vector<8x128xf32>
    %cst_155 = arith.constant 4.471500e-02 : f32
    %448 = vector.broadcast %cst_155 : f32 to vector<8x128xf32>
    %449 = arith.mulf %448, %447 : vector<8x128xf32>
    %450 = arith.addf %445, %449 : vector<8x128xf32>
    %cst_156 = arith.constant 0.797884583 : f32
    %451 = vector.broadcast %cst_156 : f32 to vector<8x128xf32>
    %452 = arith.mulf %451, %450 : vector<8x128xf32>
    %453 = math.tanh %452 : vector<8x128xf32>
    %cst_157 = arith.constant 1.000000e+00 : f32
    %454 = vector.broadcast %cst_157 : f32 to vector<8x128xf32>
    %455 = arith.addf %454, %453 : vector<8x128xf32>
    %cst_158 = arith.constant 5.000000e-01 : f32
    %456 = vector.broadcast %cst_158 : f32 to vector<8x128xf32>
    %457 = arith.mulf %456, %455 : vector<8x128xf32>
    %458 = arith.mulf %445, %457 : vector<8x128xf32>
    %c0_159 = arith.constant 0 : index
    %c0_160 = arith.constant 0 : index
    %459 = vector.load %arg23[%c0_159, %c0_160] : memref<128x32xf32, #tpu.memory_space<vmem>>, vector<128x32xf32>
    %cst_161 = arith.constant dense<0.000000e+00> : vector<8x32xf32>
    %460 = tpu.matmul %458, %459, %cst_161 {dimension_numbers = #tpu.dot_dimension_numbers<[1], [0], [0], [1], [0, 0, 1, 1], [], []>} : vector<8x128xf32>, vector<128x32xf32>, vector<8x32xf32> -> vector<8x32xf32>
    %c0_162 = arith.constant 0 : index
    %c0_163 = arith.constant 0 : index
    %461 = vector.load %arg24[%c0_162, %c0_163] : memref<1x32xf32, #tpu.memory_space<vmem>>, vector<1x32xf32>
    %462 = vector.broadcast %461 : vector<1x32xf32> to vector<8x32xf32>
    %463 = arith.addf %460, %462 : vector<8x32xf32>
    %464 = arith.addf %416, %463 : vector<8x32xf32>
    %cst_164 = arith.constant dense<0.000000e+00> : vector<8xf32>
    %465 = vector.multi_reduction <add>, %464, %cst_164 [1] : vector<8x32xf32> to vector<8xf32>
    %466 = vector.shape_cast %465 : vector<8xf32> to vector<8x1xf32>
    %cst_165 = arith.constant 3.200000e+01 : f32
    %467 = vector.broadcast %cst_165 : f32 to vector<8x1xf32>
    %468 = arith.divf %466, %467 : vector<8x1xf32>
    %469 = vector.broadcast %468 : vector<8x1xf32> to vector<8x32xf32>
    %470 = arith.subf %464, %469 : vector<8x32xf32>
    %471 = arith.mulf %470, %470 : vector<8x32xf32>
    %cst_166 = arith.constant dense<0.000000e+00> : vector<8xf32>
    %472 = vector.multi_reduction <add>, %471, %cst_166 [1] : vector<8x32xf32> to vector<8xf32>
    %473 = vector.shape_cast %472 : vector<8xf32> to vector<8x1xf32>
    %cst_167 = arith.constant 3.200000e+01 : f32
    %474 = vector.broadcast %cst_167 : f32 to vector<8x1xf32>
    %475 = arith.divf %473, %474 : vector<8x1xf32>
    %476 = vector.broadcast %468 : vector<8x1xf32> to vector<8x32xf32>
    %477 = arith.subf %464, %476 : vector<8x32xf32>
    %cst_168 = arith.constant 9.99999997E-7 : f32
    %478 = vector.broadcast %cst_168 : f32 to vector<8x1xf32>
    %479 = arith.addf %475, %478 : vector<8x1xf32>
    %480 = math.rsqrt %479 : vector<8x1xf32>
    %481 = vector.broadcast %480 : vector<8x1xf32> to vector<8x32xf32>
    %482 = arith.mulf %477, %481 : vector<8x32xf32>
    %c0_169 = arith.constant 0 : index
    %c0_170 = arith.constant 0 : index
    %483 = vector.load %arg25[%c0_169, %c0_170] : memref<1x32xf32, #tpu.memory_space<vmem>>, vector<1x32xf32>
    %484 = vector.broadcast %483 : vector<1x32xf32> to vector<8x32xf32>
    %485 = arith.mulf %482, %484 : vector<8x32xf32>
    %c0_171 = arith.constant 0 : index
    %c0_172 = arith.constant 0 : index
    %486 = vector.load %arg26[%c0_171, %c0_172] : memref<1x32xf32, #tpu.memory_space<vmem>>, vector<1x32xf32>
    %487 = vector.broadcast %486 : vector<1x32xf32> to vector<8x32xf32>
    %488 = arith.addf %485, %487 : vector<8x32xf32>
    %489 = vector.extract_strided_slice %488 {offsets = [0, 0], sizes = [4, 32], strides = [1, 1]} : vector<8x32xf32> to vector<4x32xf32>
    %cst_173 = arith.constant dense<0.000000e+00> : vector<32xf32>
    %490 = vector.multi_reduction <add>, %489, %cst_173 [0] : vector<4x32xf32> to vector<32xf32>
    %491 = vector.shape_cast %490 : vector<32xf32> to vector<1x32xf32>
    %cst_174 = arith.constant 4.000000e+00 : f32
    %492 = vector.broadcast %cst_174 : f32 to vector<1x32xf32>
    %493 = arith.divf %491, %492 : vector<1x32xf32>
    %494 = vector.extract_strided_slice %488 {offsets = [4, 0], sizes = [4, 32], strides = [1, 1]} : vector<8x32xf32> to vector<4x32xf32>
    %cst_175 = arith.constant dense<0.000000e+00> : vector<32xf32>
    %495 = vector.multi_reduction <add>, %494, %cst_175 [0] : vector<4x32xf32> to vector<32xf32>
    %496 = vector.shape_cast %495 : vector<32xf32> to vector<1x32xf32>
    %cst_176 = arith.constant 4.000000e+00 : f32
    %497 = vector.broadcast %cst_176 : f32 to vector<1x32xf32>
    %498 = arith.divf %496, %497 : vector<1x32xf32>
    %499 = tpu.concatenate %493, %498 in 0 : vector<1x32xf32>, vector<1x32xf32> -> vector<2x32xf32>
    %c0_177 = arith.constant 0 : index
    %c0_178 = arith.constant 0 : index
    %500 = vector.load %arg27[%c0_177, %c0_178] : memref<32x64xf32, #tpu.memory_space<vmem>>, vector<32x64xf32>
    %cst_179 = arith.constant dense<0.000000e+00> : vector<2x64xf32>
    %501 = tpu.matmul %499, %500, %cst_179 {dimension_numbers = #tpu.dot_dimension_numbers<[1], [0], [0], [1], [0, 0, 1, 1], [], []>} : vector<2x32xf32>, vector<32x64xf32>, vector<2x64xf32> -> vector<2x64xf32>
    %c0_180 = arith.constant 0 : index
    %c0_181 = arith.constant 0 : index
    %502 = vector.load %arg28[%c0_180, %c0_181] : memref<1x64xf32, #tpu.memory_space<vmem>>, vector<1x64xf32>
    %503 = vector.broadcast %502 : vector<1x64xf32> to vector<2x64xf32>
    %504 = arith.addf %501, %503 : vector<2x64xf32>
    %cst_182 = arith.constant 0.000000e+00 : f32
    %505 = vector.broadcast %cst_182 : f32 to vector<2x64xf32>
    %506 = arith.maximumf %504, %505 : vector<2x64xf32>
    %c0_183 = arith.constant 0 : index
    %c0_184 = arith.constant 0 : index
    %507 = vector.load %arg29[%c0_183, %c0_184] : memref<64x768xf32, #tpu.memory_space<vmem>>, vector<64x768xf32>
    %cst_185 = arith.constant dense<0.000000e+00> : vector<2x768xf32>
    %508 = tpu.matmul %506, %507, %cst_185 {dimension_numbers = #tpu.dot_dimension_numbers<[1], [0], [0], [1], [0, 0, 1, 1], [], []>} : vector<2x64xf32>, vector<64x768xf32>, vector<2x768xf32> -> vector<2x768xf32>
    %c0_186 = arith.constant 0 : index
    %c0_187 = arith.constant 0 : index
    %509 = vector.load %arg30[%c0_186, %c0_187] : memref<1x768xf32, #tpu.memory_space<vmem>>, vector<1x768xf32>
    %510 = vector.broadcast %509 : vector<1x768xf32> to vector<2x768xf32>
    %511 = arith.addf %508, %510 : vector<2x768xf32>
    %c0_188 = arith.constant 0 : index
    %c0_189 = arith.constant 0 : index
    %512 = vector.load %arg31[%c0_188, %c0_189] : memref<2x768xf32, #tpu.memory_space<vmem>>, vector<2x768xf32>
    tpu.vector_store %arg31[%c0_188, %c0_189], %511 {strides = array<i32>} : memref<2x768xf32, #tpu.memory_space<vmem>>, vector<2x768xf32>,
    return
  }
}

</mosaic_0001>

<bundles_post_ra>
// kernel: mae_forward.2
= control target key start
LH: loop header
LB: loop body
LE: loop exit
PB: predicated region body
PF: predicated region fallthrough
CT: control target
= control target key end

     0   :  { %vm31_vm0 = vcmask 392192   ;;  %vm129_vm1 = vcmask 261120   ;;  %s248_s1 = inlined_call_operand.vmem [shape: f32[48,32], index: 1, kind: input, shape index: {}]   ;;  %s249_s0 = inlined_call_operand.vmem [shape: f32[32,48], index: 0, kind: input, shape index: {}]   ;;  %s250_s2 = inlined_call_operand.vmem [shape: f32[1,32], index: 2, kind: input, shape index: {}]   ;;  %s251_s3 = inlined_call_operand.vmem [shape: f32[32,32], index: 3, kind: output, shape index: {}]  }
   0x1   :  { %v23_v0 = vld [vmem:[%s248_s1 + $0x28] sm:$0xff]  ;;  %v22_v1 = vld [vmem:[%s248_s1 + $0x20] sm:$0xff]  ;;  %v21_v2 = vld [vmem:[%s248_s1 + $0x18] sm:$0xff] }
   0x2   :  { %153 = vmatprep.subr.mxu0 %v23_v0  ;;  %171 = vmatprep.subr.mxu1 %v23_v0  ;;  %v20_v3 = vld [vmem:[%s248_s1 + $0x10] sm:$0xff]  ;;  %v19_v4 = vld [vmem:[%s248_s1 + $0x8] sm:$0xff]  ;;  %v18_v5 = vld [vmem:[%s248_s1] sm:$0xff] }
   0x3   :  { %154 = vmatpush3.msra.mxu0 %v23_v0  ;;  %177 = vmatpush3.msra.mxu1 %v23_v0  ;;  %v14_v6 = vld [vmem:[%s249_s0] sm:$0xff]  ;;  %v16_v7 = vld [vmem:[%s249_s0 + $0x10] sm:$0xff]  ;;  %v15_v8 = vld [vmem:[%s249_s0 + $0x8] sm:$0xff] }
   0x4   :  { %155 = vmatprep.subr.mxu0 %v22_v1  ;;  %172 = vmatprep.subr.mxu1 %v22_v1  ;;  %v17_v9 = vld [vmem:[%s249_s0 + $0x18] sm:$0xff]  ;;  %v138_v10 = vld [vmem:[%s250_s2] ss:$0 sm:$0xff] }
   0x5   :  { %156 = vmatpush3.msra.mxu0 %v22_v1  ;;  %178 = vmatpush3.msra.mxu1 %v22_v1 }
   0x6   :  { %157 = vmatprep.subr.mxu0 %v21_v2  ;;  %173 = vmatprep.subr.mxu1 %v21_v2 }
   0x7   :  { %158 = vmatpush3.msra.mxu0 %v21_v2  ;;  %179 = vmatpush3.msra.mxu1 %v21_v2 }
   0x8   :  { %159 = vmatprep.subr.mxu0 %v20_v3  ;;  %174 = vmatprep.subr.mxu1 %v20_v3 }
   0x9   :  { %160 = vmatpush3.msra.mxu0 %v20_v3  ;;  %180 = vmatpush3.msra.mxu1 %v20_v3 }
   0xa   :  { %161 = vmatprep.subr.mxu0 %v19_v4  ;;  %175 = vmatprep.subr.mxu1 %v19_v4 }
   0xb   :  { %162 = vmatpush3.msra.mxu0 %v19_v4  ;;  %181 = vmatpush3.msra.mxu1 %v19_v4 }
   0xc   :  { %163 = vmatprep.subr.mxu0 %v18_v5  ;;  %176 = vmatprep.subr.mxu1 %v18_v5 }
   0xd   :  { %164 = vmatpush3.msra.mxu0 %v18_v5  ;;  %182 = vmatpush3.msra.mxu1 %v18_v5 }
   0xe   :  { %165 = vmatprep.mubr.msk.f32.mxu0 %vm31_vm0, %v14_v6  ;;  %168 = vmatprep.mubr.msk.f32.mxu1 %vm31_vm0, %v16_v7 }
   0xf   :  { %166 = vmatmul.mubr.msk.f32.vlgmr.msra.gmra.mxu0 %vm31_vm0, %v15_v8  ;;  %169 = vmatmul.mubr.msk.f32.vlgmr.msra.gmra.mxu1 %vm31_vm0, %v17_v9 }
  0xcf   :  { %v167_v11 = vpop.f32.mrf.mxu0  ;;  %v170_v12 = vpop.f32.mrf.mxu1 }
  0xd0   :  { %v116_v13 = vadd.f32 %v167_v11, %v138_v10  ;;  %v126_v14 = vadd.f32 %v170_v12, %v138_v10 }
  0xd1   :  { %v110_v15 = vpop.f32.mrf.mxu0  ;;  %v120_v16 = vpop.f32.mrf.mxu1 }
  0xd2   :  { %131 = vst.msk [vmem:[%s251_s3 + $0x8] sm:$0xff] %vm129_vm1, %v116_v13  ;;  %133 = vst.msk [vmem:[%s251_s3 + $0x18] sm:$0xff] %vm129_vm1, %v126_v14  ;;  %v111_v17 = vadd.f32 %v138_v10, %v110_v15  ;;  %v121_v18 = vadd.f32 %v138_v10, %v120_v16 }
  0xd4   :  { %130 = vst.msk [vmem:[%s251_s3] sm:$0xff] %vm129_vm1, %v111_v17  ;;  %132 = vst.msk [vmem:[%s251_s3 + $0x10] sm:$0xff] %vm129_vm1, %v121_v18 }

// kernel: mae_forward.3
= control target key start
LH: loop header
LB: loop body
LE: loop exit
PB: predicated region body
PF: predicated region fallthrough
CT: control target
= control target key end

     0   :  { %vm131_vm0 = vcmask 261120   ;;  %v4864_v7 = vmov 0.0   ;;  %s4865_s6 = smov 3   ;;  %vm4866_vm1 = vmmov 0   ;;  %s4867_s10 = smov 1   ;;  %vm249_vm2 = vcmask 64512   ;;  %s5585_s0 = inlined_call_operand.smem [shape: u32[32], index: -1, kind: input, shape index: {}] }
   0x1   :  { %s1_s5 = sld [smem:[%s5585_s0]]   ;;  %4434 = vmatprep.subr.mxu0 %v4864_v7  ;;  %4442 = vmatprep.mubr.msk.f32.mxu0 %vm4866_vm1, %v4864_v7  ;;  %s4868_s14 = smov 2   ;;  %vm343_vm3 = vcmask 1043456   ;;  %vm325_vm4 = vcmask 27648   ;;  %vm339_vm5 = vcmask 31744   ;;  %vm930_vm6 = vcmask 130048  }
   0x2   :  { %s4178_s9 = sld [smem:[%s5585_s0 + %s4865_s6]]   ;;  %4445 = vmatprep.subr.mxu1 %v4864_v7  ;;  %4447 = vmatprep.mubr.msk.f32.mxu1 %vm4866_vm1, %v4864_v7  ;;  %s4869_s18 = smov 4   ;;  %vm932_vm7 = vcmask 195584   ;;  %vm3732_vm8 = vcmask 257024   ;;  %vm3753_vm9 = vcmask 1040384   ;;  %vm3920_vm10 = vcmask 523264  }
   0x3   :  { %s4176_s13 = sld [smem:[%s5585_s0 + %s4867_s10]]   ;;  %s4870_s22 = smov 64  }
   0x4   :  { %s4177_s17 = sld [smem:[%s5585_s0 + %s4868_s14]]   ;;  %s4871_s23 = smov 96  }
   0x5   :  { %s4179_s21 = sld [smem:[%s5585_s0 + %s4869_s18]]   ;;  %s4872_s24 = smov 88  }
   0x6   :  { %s4873_s25 = smov 120   ;;  %s4874_s26 = smov 80  }
   0x7   :  { %v4917_v0 = vld [vmem:[%s1_s5] sm:$0xff]  ;;  %s4875_s27 = smov 72   ;;  %s4876_s28 = smov 112  }
   0x8   :  { %v132_v1 = vsel %vm131_vm0, %v4917_v0, 0.0  ;;  %v165_v8 = vld [vmem:[%s4178_s9 + $0x18] sm:$0xff]  ;;  %v164_v9 = vld [vmem:[%s4178_s9 + $0x10] sm:$0xff]  ;;  %v163_v10 = vld [vmem:[%s4178_s9 + $0x8] sm:$0xff]  ;;  %s4877_s29 = smov 104   ;;  %s4878_s30 = smov 56  }
   0x9   :  { %133 = vadd.xlane.f32.xlu0 %v132_v1  ;;  %4435 = vmatpush3.msra.mxu0 %v165_v8  ;;  %v162_v11 = vld [vmem:[%s4178_s9] sm:$0xff]  ;;  %s4879_s1 = smov 40   ;;  %s4880_s2 = smov 48  }
   0xa   :  { %4436 = vmatprep.subr.mxu0 %v4864_v7  ;;  %v4207_v16 = vld [vmem:[%s4176_s13] ss:$0 sm:$0xff]  ;;  %s4881_s3 = smov 8   ;;  %s4882_s4 = smov 5  }
   0xb   :  { %4437 = vmatpush3.msra.mxu0 %v164_v9  ;;  %v4208_v18 = vld [vmem:[%s4177_s17] ss:$0 sm:$0xff]  ;;  %s4180_s7 = sld [smem:[%s5585_s0 + %s4882_s4]]   ;;  %s4883_s8 = smov 16  }
   0xc   :  { %4438 = vmatprep.subr.mxu0 %v4864_v7  ;;  %v4209_v21 = vld [vmem:[%s4179_s21] ss:$0 sm:$0xff]  ;;  %s4884_s9 = smov 24   ;;  %s4885_s10 = smov 6  }
   0xd   :  { %4439 = vmatpush3.msra.mxu0 %v163_v10  ;;  %s4181_s13 = sld [smem:[%s5585_s0 + %s4885_s10]]   ;;  %s4886_s14 = smov 9  }
   0xe   :  { %4440 = vmatprep.subr.mxu0 %v4864_v7  ;;  %s4184_s17 = sld [smem:[%s5585_s0 + %s4886_s14]]   ;;  %s4887_s18 = smov 7  }
   0xf   :  { %4441 = vmatpush3.msra.mxu0 %v162_v11  ;;  %s4182_s21 = sld [smem:[%s5585_s0 + %s4887_s18]]   ;;  %s4898_s5 = smov 20  }
  0x10   :  { %4465 = vmatprep.subr.mxu0 %v4864_v7  ;;  %s4183_s6 = sld [smem:[%s5585_s0 + %s4881_s3]]   ;;  %s4899_s11 = smov 23  }
  0x11   :  { %s4191_s19 = sld [smem:[%s5585_s0 + %s4883_s8]]   ;;  %s4900_s15 = smov 22  }
  0x12   :  { %s4195_s10 = sld [smem:[%s5585_s0 + %s4898_s5]]  }
  0x13   :  { %s5457_s14 = sld [smem:[%s5585_s0 + %s4899_s11]]  }
  0x14   :  { %s4197_s18 = sld [smem:[%s5585_s0 + %s4900_s15]]  }
  0x92   :  { %v134_v2 = vpop.xlane.xlu0 %133 }
  0x93   :  { %v136_v3 = vmul.f32 0.03125, %v134_v2 }
  0x95   :  { %v137_v4 = vsub.f32 %v4917_v0, %v136_v3 }
  0x97   :  { %v138_v5 = vmul.f32 %v137_v4, %v137_v4 }
  0x99   :  { %v139_v6 = vsel %vm131_vm0, %v138_v5, 0.0 }
  0x9a   :  { %140 = vadd.xlane.f32.xlu0 %v139_v6 }
 0x123   :  { %v141_v12 = vpop.xlane.xlu0 %140 }
 0x124   :  { %v142_v13 = vmul.f32 0.03125, %v141_v12 }
 0x126   :  { %v143_v14 = vadd.f32 1e-06, %v142_v13 }
 0x128   :  { %4786 = vrsqrt.f32 %v143_v14 }
 0x135   :  { %v4787_v15 = vpop.eup %4786 }
 0x136   :  { %v145_v17 = vmul.f32 %v4787_v15, %v137_v4 }
 0x138   :  { %v153_v19 = vmul.f32 %v4207_v16, %v145_v17 }
 0x13a   :  { %v161_v20 = vadd.f32 %v4208_v18, %v153_v19 }
 0x13c   :  { %4443 = vmatmul.mubr.msk.f32.vlgmr.msra.gmra.mxu0 %vm131_vm0, %v161_v20 }
 0x13d   :  { %4467 = vmatprep.mubr.msk.f32.mxu0 %vm4866_vm1, %v4864_v7 }
 0x1fc   :  { %v242_v22 = vpop.f32.mrf.mxu0 }
 0x1fd   :  { %v4948_v23 = vadd.f32 %v4209_v21, %v242_v22 }
 0x1fe   :  { %v4444_v24 = vpop.f32.mrf.mxu0 }
 0x1ff   :  { %337 = vrot.lane.b32.xlu0 %v4948_v23, %s4870_s22  ;;  %247 = vrot.lane.b32.xlu1 %v4948_v23, %s4871_s23  ;;  %v4970_v31 = vrot.slane %v4948_v23, 4 }
 0x203   :  { %418 = vrot.lane.b32.xlu0 %v4948_v23, %s4872_s24 }
 0x207   :  { %416 = vrot.lane.b32.xlu0 %v4948_v23, %s4873_s25 }
 0x271   :  { %v248_v25 = vpop.permute.xlu1 %247  ;;  %v338_v26 = vpop.permute.xlu0 %337 }
 0x272   :  { %4446 = vmatpush3.xpose.msk.msra.mxu1 %vm249_vm2, %v248_v25 }
 0x273   :  { %4450 = vmatprep.subr.mxu1 %v4864_v7 }
 0x275   :  { %4448 = vmatmul.mubr.msk.f32.vlgmr.msra.gmra.mxu1 %vm249_vm2, %v4948_v23  ;;  %v419_v38 = vpop.permute.xlu0 %418 }
 0x276   :  { %4451 = vmatpush3.msk.msra.mxu1 %vm343_vm3, %v338_v26  ;;  %4452 = vmatprep.mubr.msk.f32.mxu1 %vm4866_vm1, %v4864_v7 }
 0x277   :  { %4455 = vmatprep.subr.mxu1 %v4864_v7 }
 0x279   :  { %v417_v39 = vpop.permute.xlu0 %416 }
 0x335   :  { %v320_v27 = vpop.f32.mrf.mxu1 }
 0x336   :  { %v324_v28 = vmul.f32 0.35355338, %v320_v27 }
 0x337   :  { %v4449_v29 = vpop.f32.mrf.mxu1 }
 0x338   :  { %v326_v30 = vsel %vm325_vm4, %v324_v28, -inf }
 0x339   :  { %327 = vmax.xlane.f32.xlu1 %v326_v30 }
 0x34a   :  { %585 = vrot.lane.b32.xlu1 %v4948_v23, %s4874_s26 }
 0x34e   :  { %1102 = vrot.lane.b32.xlu1 %v4970_v31, %s4872_s24 }
 0x352   :  { %1269 = vrot.lane.b32.xlu1 %v4970_v31, %s4874_s26 }
 0x356   :  { %1436 = vrot.lane.b32.xlu1 %v4970_v31, %s4875_s27 }
 0x3c2   :  { %v328_v32 = vpop.xlane.xlu1 %327 }
 0x3c3   :  { %v329_v33 = vsub.f32 %v324_v28, %v328_v32 }
 0x3c5   :  { %v330_v34 = vmul.f32 1.442695, %v329_v33 }
 0x3c6   :  { %v586_v35 = vpop.permute.xlu1 %585 }
 0x3c7   :  { %4788 = vpow2.f32 %v330_v34  ;;  %4466 = vmatpush3.xpose.msk.msra.mxu0 %vm249_vm2, %v586_v35 }
 0x3c8   :  { %4475 = vmatprep.subr.mxu0 %v4864_v7 }
 0x3ca   :  { %v1103_v46 = vpop.permute.xlu1 %1102 }
 0x3ce   :  { %v1270_v49 = vpop.permute.xlu1 %1269 }
 0x3d2   :  { %v1437_v51 = vpop.permute.xlu1 %1436 }
 0x3d4   :  { %v4789_v36 = vpop.eup %4788 }
 0x3d5   :  { %v332_v37 = vsel %vm325_vm4, %v4789_v36, 0.0 }
 0x3d6   :  { %333 = vadd.xlane.f32.xlu0 %v332_v37 }
 0x3ec   :  { %583 = vrot.lane.b32.xlu0 %v4948_v23, %s4876_s28 }
 0x3f0   :  { %752 = vrot.lane.b32.xlu0 %v4948_v23, %s4875_s27 }
 0x3f4   :  { %750 = vrot.lane.b32.xlu0 %v4948_v23, %s4877_s29 }
 0x3f8   :  { %935 = vrot.lane.b32.xlu0 %v4970_v31, %s4871_s23 }
 0x3fc   :  { %1100 = vrot.lane.b32.xlu0 %v4970_v31, %s4873_s25 }
 0x400   :  { %1267 = vrot.lane.b32.xlu0 %v4970_v31, %s4876_s28 }
 0x404   :  { %1434 = vrot.lane.b32.xlu0 %v4970_v31, %s4877_s29 }
 0x45f   :  { %v334_v40 = vpop.xlane.xlu0 %333 }
 0x460   :  { %4790 = vrcp.f32 %v334_v40 }
 0x463   :  { %v584_v41 = vpop.permute.xlu0 %583 }
 0x464   :  { %4468 = vmatmul.mubr.msk.f32.vlgmr.msra.gmra.mxu0 %vm249_vm2, %v584_v41 }
 0x465   :  { %4477 = vmatprep.mubr.msk.f32.mxu0 %vm4866_vm1, %v4864_v7 }
 0x467   :  { %v753_v42 = vpop.permute.xlu0 %752 }
 0x468   :  { %4476 = vmatpush3.xpose.msk.msra.mxu0 %vm249_vm2, %v753_v42 }
 0x469   :  { %4485 = vmatprep.subr.mxu0 %v4864_v7 }
 0x46b   :  { %v751_v43 = vpop.permute.xlu0 %750 }
 0x46c   :  { %4478 = vmatmul.mubr.msk.f32.vlgmr.msra.gmra.mxu0 %vm249_vm2, %v751_v43 }
 0x46d   :  { %v4791_v44 = vpop.eup %4790  ;;  %4487 = vmatprep.mubr.msk.f32.mxu0 %vm4866_vm1, %v4864_v7 }
 0x46e   :  { %v336_v45 = vmul.f32 %v4791_v44, %v4789_v36 }
 0x46f   :  { %v936_v47 = vpop.permute.xlu0 %935 }
 0x470   :  { %4453 = vmatmul.mubr.msk.f32.vlgmr.msra.gmra.mxu1 %vm339_vm5, %v336_v45  ;;  %4486 = vmatpush3.xpose.msk.msra.mxu0 %vm249_vm2, %v936_v47 }
 0x471   :  { %4456 = vmatpush3.xpose.msk.msra.mxu1 %vm249_vm2, %v419_v38  ;;  %4457 = vmatprep.mubr.msk.f32.mxu1 %vm4866_vm1, %v4864_v7 }
 0x472   :  { %4495 = vmatprep.subr.mxu0 %v4864_v7  ;;  %4460 = vmatprep.subr.mxu1 %v4864_v7 }
 0x473   :  { %4488 = vmatmul.mubr.msk.f32.vlgmr.msra.gmra.mxu0 %vm249_vm2, %v4970_v31  ;;  %v1101_v48 = vpop.permute.xlu0 %1100 }
 0x474   :  { %4458 = vmatmul.mubr.msk.f32.vlgmr.msra.gmra.mxu1 %vm249_vm2, %v417_v39  ;;  %4496 = vmatpush3.xpose.msk.msra.mxu0 %vm249_vm2, %v1103_v46 }
 0x475   :  { %4497 = vmatprep.mubr.msk.f32.mxu0 %vm4866_vm1, %v4864_v7  ;;  %4505 = vmatprep.subr.mxu0 %v4864_v7 }
 0x476   :  { %4462 = vmatprep.mubr.msk.f32.mxu1 %vm4866_vm1, %v4864_v7 }
 0x477   :  { %4498 = vmatmul.mubr.msk.f32.vlgmr.msra.gmra.mxu0 %vm249_vm2, %v1101_v48  ;;  %v1268_v50 = vpop.permute.xlu0 %1267 }
 0x478   :  { %4506 = vmatpush3.xpose.msk.msra.mxu0 %vm249_vm2, %v1270_v49  ;;  %4507 = vmatprep.mubr.msk.f32.mxu0 %vm4866_vm1, %v4864_v7 }
 0x479   :  { %4515 = vmatprep.subr.mxu0 %v4864_v7 }
 0x47b   :  { %4508 = vmatmul.mubr.msk.f32.vlgmr.msra.gmra.mxu0 %vm249_vm2, %v1268_v50  ;;  %v1435_v52 = vpop.permute.xlu0 %1434 }
 0x47c   :  { %4516 = vmatpush3.xpose.msk.msra.mxu0 %vm249_vm2, %v1437_v51  ;;  %4517 = vmatprep.mubr.msk.f32.mxu0 %vm4866_vm1, %v4864_v7 }
 0x47d   :  { %4525 = vmatprep.subr.mxu0 %v4864_v7 }
 0x47f   :  { %4518 = vmatmul.mubr.msk.f32.vlgmr.msra.gmra.mxu0 %vm249_vm2, %v1435_v52 }
 0x480   :  { %4533 = vmatprep.mubr.msk.f32.mxu0 %vm4866_vm1, %v4864_v7 }
 0x524   :  { %v657_v53 = vpop.f32.mrf.mxu0 }
 0x525   :  { %v661_v54 = vmul.f32 0.35355338, %v657_v53 }
 0x526   :  { %v4469_v55 = vpop.f32.mrf.mxu0 }
 0x527   :  { %v662_v56 = vsel %vm325_vm4, %v661_v54, -inf }
 0x528   :  { %663 = vmax.xlane.f32.xlu0 %v662_v56 }
 0x52c   :  { %v824_v57 = vpop.f32.mrf.mxu0 }
 0x52d   :  { %v828_v58 = vmul.f32 0.35355338, %v824_v57 }
 0x52e   :  { %v4479_v59 = vpop.f32.mrf.mxu0 }
 0x52f   :  { %v829_v60 = vsel %vm325_vm4, %v828_v58, -inf }
 0x530   :  { %v5034_v61 = vpop.f32.mrf.mxu1  ;;  %830 = vmax.xlane.f32.xlu0 %v829_v60 }
 0x532   :  { %v4454_v62 = vpop.f32.mrf.mxu1 }
 0x533   :  { %v1007_v63 = vpop.f32.mrf.mxu0 }
 0x534   :  { %v1011_v1 = vmul.f32 0.35355338, %v1007_v63  ;;  %v490_v2 = vpop.f32.mrf.mxu1 }
 0x535   :  { %v494_v3 = vmul.f32 0.35355338, %v490_v2  ;;  %v4489_v4 = vpop.f32.mrf.mxu0 }
 0x536   :  { %v4459_v5 = vpop.f32.mrf.mxu1  ;;  %v1012_v6 = vsel %vm325_vm4, %v1011_v1, -inf }
 0x537   :  { %1013 = vmax.xlane.f32.xlu0 %v1012_v6  ;;  %v1174_v8 = vpop.f32.mrf.mxu0  ;;  %v495_v9 = vsel %vm325_vm4, %v494_v3, -inf }
 0x538   :  { %v1178_v10 = vmul.f32 0.35355338, %v1174_v8  ;;  %496 = vmax.xlane.f32.xlu1 %v495_v9 }
 0x539   :  { %v4499_v11 = vpop.f32.mrf.mxu0 }
 0x53a   :  { %v1179_v12 = vsel %vm325_vm4, %v1178_v10, -inf }
 0x53b   :  { %v1341_v13 = vpop.f32.mrf.mxu0 }
 0x53c   :  { %v1345_v14 = vmul.f32 0.35355338, %v1341_v13  ;;  %1180 = vmax.xlane.f32.xlu1 %v1179_v12 }
 0x53d   :  { %v4509_v15 = vpop.f32.mrf.mxu0 }
 0x53e   :  { %v1346_v16 = vsel %vm325_vm4, %v1345_v14, -inf }
 0x53f   :  { %1347 = vmax.xlane.f32.xlu0 %v1346_v16  ;;  %v1508_v17 = vpop.f32.mrf.mxu0 }
 0x540   :  { %v1512_v18 = vmul.f32 0.35355338, %v1508_v17 }
 0x541   :  { %v4519_v19 = vpop.f32.mrf.mxu0 }
 0x542   :  { %v1513_v20 = vsel %vm325_vm4, %v1512_v18, -inf }
 0x543   :  { %1514 = vmax.xlane.f32.xlu1 %v1513_v20 }
 0x5b1   :  { %v664_v21 = vpop.xlane.xlu0 %663 }
 0x5b2   :  { %v665_v22 = vsub.f32 %v661_v54, %v664_v21 }
 0x5b4   :  { %v666_v24 = vmul.f32 1.442695, %v665_v22 }
 0x5b6   :  { %4792 = vpow2.f32 %v666_v24 }
 0x5b9   :  { %v831_v25 = vpop.xlane.xlu0 %830 }
 0x5ba   :  { %v832_v26 = vsub.f32 %v828_v58, %v831_v25 }
 0x5bc   :  { %v833_v27 = vmul.f32 1.442695, %v832_v26 }
 0x5be   :  { %4794 = vpow2.f32 %v833_v27 }
 0x5c0   :  { %v1014_v28 = vpop.xlane.xlu0 %1013 }
 0x5c1   :  { %v1015_v29 = vsub.f32 %v1011_v1, %v1014_v28  ;;  %v497_v30 = vpop.xlane.xlu1 %496 }
 0x5c2   :  { %v498_v41 = vsub.f32 %v494_v3, %v497_v30  ;;  %v1623_v30 = vld [vmem:[%s4180_s7 + $0x18] sm:$0xff] }
 0x5c3   :  { %v5041_v32 = vpop.eup %4792  ;;  %v1016_v33 = vmul.f32 1.442695, %v1015_v29  ;;  %4526 = vmatpush3.msra.mxu0 %v1623_v30 }
 0x5c4   :  { %v668_v34 = vsel %vm325_vm4, %v5041_v32, 0.0  ;;  %v499_v46 = vmul.f32 1.442695, %v498_v41  ;;  %4527 = vmatprep.subr.mxu0 %v4864_v7 }
 0x5c5   :  { %4796 = vpow2.f32 %v1016_v33  ;;  %v1181_v35 = vpop.xlane.xlu1 %1180  ;;  %669 = vadd.xlane.f32.xlu1 %v668_v34  ;;  %v1622_v33 = vld [vmem:[%s4180_s7 + $0x10] sm:$0xff]  ;;  %v1621_v34 = vld [vmem:[%s4180_s7 + $0x8] sm:$0xff] }
 0x5c6   :  { %v1182_v36 = vsub.f32 %v1178_v10, %v1181_v35  ;;  %4528 = vmatpush3.msra.mxu0 %v1622_v33 }
 0x5c7   :  { %4529 = vmatprep.subr.mxu0 %v4864_v7 }
 0x5c8   :  { %v1183_v37 = vmul.f32 1.442695, %v1182_v36  ;;  %v1348_v38 = vpop.xlane.xlu0 %1347  ;;  %4530 = vmatpush3.msra.mxu0 %v1621_v34 }
 0x5c9   :  { %v1349_v39 = vsub.f32 %v1345_v14, %v1348_v38  ;;  %4531 = vmatprep.subr.mxu0 %v4864_v7 }
 0x5ca   :  { %4798 = vpow2.f32 %v1183_v37  ;;  %v1620_v37 = vld [vmem:[%s4180_s7] sm:$0xff]  ;;  %s4888_s7 = smov 11  }
 0x5cb   :  { %v5045_v40 = vpop.eup %4794  ;;  %v1350_v42 = vmul.f32 1.442695, %v1349_v39  ;;  %4532 = vmatpush3.msra.mxu0 %v1620_v37  ;;  %s5175_s12 = sld [smem:[%s5585_s0 + %s4888_s7]]   ;;  %s4892_s7 = smov 13  }
 0x5cc   :  { %v1515_v43 = vpop.xlane.xlu1 %1514  ;;  %v835_v44 = vsel %vm325_vm4, %v5045_v40, 0.0  ;;  %4547 = vmatprep.subr.mxu0 %v4864_v7 }
 0x5cd   :  { %4800 = vpow2.f32 %v1350_v42  ;;  %v1516_v45 = vsub.f32 %v1512_v18, %v1515_v43  ;;  %836 = vadd.xlane.f32.xlu0 %v835_v44 }
 0x5cf   :  { %v1517_v47 = vmul.f32 1.442695, %v1516_v45 }
 0x5d1   :  { %4802 = vpow2.f32 %v1517_v47  ;;  %v1829_v30 = vld [vmem:[%s5175_s12 + $0x10] sm:$0xff]  ;;  %v1827_v33 = vld [vmem:[%s5175_s12] sm:$0xff] }
 0x5d2   :  { %v5049_v48 = vpop.eup %4796  ;;  %4804 = vpow2.f32 %v499_v46 }
 0x5d3   :  { %v1018_v49 = vsel %vm325_vm4, %v5049_v48, 0.0 }
 0x5d4   :  { %1019 = vadd.xlane.f32.xlu1 %v1018_v49 }
 0x5d7   :  { %v5053_v50 = vpop.eup %4798 }
 0x5d8   :  { %v1185_v51 = vsel %vm325_vm4, %v5053_v50, 0.0 }
 0x5d9   :  { %1186 = vadd.xlane.f32.xlu0 %v1185_v51 }
 0x5da   :  { %v5057_v52 = vpop.eup %4800 }
 0x5db   :  { %v1352_v53 = vsel %vm325_vm4, %v5057_v52, 0.0 }
 0x5dc   :  { %1353 = vadd.xlane.f32.xlu1 %v1352_v53 }
 0x5de   :  { %v5061_v54 = vpop.eup %4802 }
 0x5df   :  { %v1519_v55 = vsel %vm325_vm4, %v5061_v54, 0.0  ;;  %v4805_v56 = vpop.eup %4804 }
 0x5e0   :  { %1520 = vadd.xlane.f32.xlu0 %v1519_v55  ;;  %v501_v57 = vsel %vm325_vm4, %v4805_v56, 0.0 }
 0x5e4   :  { %502 = vadd.xlane.f32.xlu0 %v501_v57  ;;  %v4243_v57 = vld [vmem:[%s4181_s13] ss:$0 sm:$0xff]  ;;  %s4889_s13 = smov 10  }
 0x5e5   :  { %s4185_s16 = sld [smem:[%s5585_s0 + %s4889_s13]]   ;;  %s4893_s13 = smov 14  }
 0x5eb   :  { %v4247_v34 = vld [vmem:[%s4185_s16] ss:$0 sm:$0xff]  ;;  %s4189_s16 = sld [smem:[%s5585_s0 + %s4893_s13]]  }
 0x5ed   :  { %506 = vrot.lane.b32.xlu1 %v4948_v23, %s4878_s30 }
 0x5f1   :  { %840 = vrot.lane.b32.xlu1 %v4948_v23, %s4879_s1 }
 0x5f5   :  { %1023 = vrot.lane.b32.xlu1 %v4970_v31, %s4870_s22 }
 0x5f9   :  { %1190 = vrot.lane.b32.xlu1 %v4970_v31, %s4878_s30 }
 0x5fa   :  { %673 = vrot.lane.b32.xlu0 %v4948_v23, %s4880_s2 }
 0x5fd   :  { %1524 = vrot.lane.b32.xlu1 %v4970_v31, %s4879_s1 }
 0x5fe   :  { %1357 = vrot.lane.b32.xlu0 %v4970_v31, %s4880_s2 }
 0x64e   :  { %v670_v58 = vpop.xlane.xlu1 %669 }
 0x656   :  { %v837_v59 = vpop.xlane.xlu0 %836 }
 0x65d   :  { %v1020_v60 = vpop.xlane.xlu1 %1019 }
 0x662   :  { %v1187_v62 = vpop.xlane.xlu0 %1186 }
 0x665   :  { %v1354_v63 = vpop.xlane.xlu1 %1353 }
 0x669   :  { %v1521_v1 = vpop.xlane.xlu0 %1520  ;;  %v507_v2 = vpop.permute.xlu1 %506 }
 0x66a   :  { %4461 = vmatpush3.msk.msra.mxu1 %vm343_vm3, %v507_v2 }
 0x66b   :  { %4470 = vmatprep.subr.mxu1 %v4864_v7 }
 0x66d   :  { %v503_v3 = vpop.xlane.xlu0 %502  ;;  %v841_v5 = vpop.permute.xlu1 %840 }
 0x66e   :  { %4806 = vrcp.f32 %v503_v3 }
 0x66f   :  { %4808 = vrcp.f32 %v670_v58 }
 0x670   :  { %4810 = vrcp.f32 %v837_v59 }
 0x671   :  { %4812 = vrcp.f32 %v1020_v60  ;;  %v674_v6 = vpop.permute.xlu0 %673  ;;  %v1024_v10 = vpop.permute.xlu1 %1023 }
 0x672   :  { %4814 = vrcp.f32 %v1187_v62 }
 0x673   :  { %4816 = vrcp.f32 %v1354_v63 }
 0x674   :  { %4818 = vrcp.f32 %v1521_v1 }
 0x675   :  { %v1191_v15 = vpop.permute.xlu1 %1190  ;;  %v1358_v18 = vpop.permute.xlu0 %1357 }
 0x679   :  { %v1525_v21 = vpop.permute.xlu1 %1524 }
 0x67b   :  { %v4807_v23 = vpop.eup %4806 }
 0x67c   :  { %v505_v4 = vmul.f32 %v4807_v23, %v4805_v56  ;;  %v4809_v31 = vpop.eup %4808 }
 0x67d   :  { %v672_v8 = vmul.f32 %v4809_v31, %v5041_v32  ;;  %v4811_v9 = vpop.eup %4810  ;;  %v1735_v31 = vld [vmem:[%s4184_s17 + $0x8] sm:$0xff] }
 0x67e   :  { %4463 = vmatmul.mubr.msk.f32.vlgmr.msra.gmra.mxu1 %vm339_vm5, %v505_v4  ;;  %v839_v11 = vmul.f32 %v4811_v9, %v5045_v40  ;;  %v4813_v12 = vpop.eup %4812  ;;  %v1737_v4 = vld [vmem:[%s4184_s17 + $0x18] sm:$0xff] }
 0x67f   :  { %4471 = vmatpush3.msk.msra.mxu1 %vm343_vm3, %v674_v6  ;;  %4472 = vmatprep.mubr.msk.f32.mxu1 %vm4866_vm1, %v4864_v7  ;;  %v1022_v13 = vmul.f32 %v4813_v12, %v5049_v48  ;;  %v4815_v14 = vpop.eup %4814 }
 0x680   :  { %4480 = vmatprep.subr.mxu1 %v4864_v7  ;;  %v1189_v16 = vmul.f32 %v4815_v14, %v5053_v50  ;;  %v4817_v17 = vpop.eup %4816 }
 0x681   :  { %v1356_v19 = vmul.f32 %v4817_v17, %v5057_v52  ;;  %v4819_v20 = vpop.eup %4818  ;;  %v1841_v17 = vld [vmem:[%s5175_s12 + $0x70] sm:$0xff] }
 0x682   :  { %4473 = vmatmul.mubr.msk.f32.vlgmr.msra.gmra.mxu1 %vm339_vm5, %v672_v8  ;;  %v1523_v22 = vmul.f32 %v4819_v20, %v5061_v54  ;;  %v1838_v20 = vld [vmem:[%s5175_s12 + $0x58] sm:$0xff] }
 0x683   :  { %4481 = vmatpush3.msk.msra.mxu1 %vm343_vm3, %v841_v5  ;;  %4482 = vmatprep.mubr.msk.f32.mxu1 %vm4866_vm1, %v4864_v7  ;;  %v1734_v5 = vld [vmem:[%s4184_s17] sm:$0xff] }
 0x684   :  { %4490 = vmatprep.subr.mxu1 %v4864_v7 }
 0x686   :  { %4483 = vmatmul.mubr.msk.f32.vlgmr.msra.gmra.mxu1 %vm339_vm5, %v839_v11  ;;  %v4245_v11 = vld [vmem:[%s4182_s21] ss:$0 sm:$0xff]  ;;  %s4891_s21 = smov 15  }
 0x687   :  { %4491 = vmatpush3.msk.msra.mxu1 %vm343_vm3, %v1024_v10  ;;  %4492 = vmatprep.mubr.msk.f32.mxu1 %vm4866_vm1, %v4864_v7 }
 0x688   :  { %4500 = vmatprep.subr.mxu1 %v4864_v7 }
 0x68a   :  { %4493 = vmatmul.mubr.msk.f32.vlgmr.msra.gmra.mxu1 %vm339_vm5, %v1022_v13  ;;  %v4246_v13 = vld [vmem:[%s4183_s6] ss:$0 sm:$0xff]  ;;  %s4190_s6 = sld [smem:[%s5585_s0 + %s4891_s21]]  }
 0x68b   :  { %4501 = vmatpush3.msk.msra.mxu1 %vm343_vm3, %v1191_v15  ;;  %4502 = vmatprep.mubr.msk.f32.mxu1 %vm4866_vm1, %v4864_v7 }
 0x68c   :  { %4510 = vmatprep.subr.mxu1 %v4864_v7 }
 0x68e   :  { %4503 = vmatmul.mubr.msk.f32.vlgmr.msra.gmra.mxu1 %vm339_vm5, %v1189_v16  ;;  %v1842_v16 = vld [vmem:[%s5175_s12 + $0x78] sm:$0xff] }
 0x68f   :  { %4511 = vmatpush3.msk.msra.mxu1 %vm343_vm3, %v1358_v18  ;;  %4512 = vmatprep.mubr.msk.f32.mxu1 %vm4866_vm1, %v4864_v7  ;;  %v1840_v18 = vld [vmem:[%s5175_s12 + $0x68] sm:$0xff] }
 0x690   :  { %4520 = vmatprep.subr.mxu1 %v4864_v7 }
 0x692   :  { %4513 = vmatmul.mubr.msk.f32.vlgmr.msra.gmra.mxu1 %vm339_vm5, %v1356_v19  ;;  %v1839_v19 = vld [vmem:[%s5175_s12 + $0x60] sm:$0xff] }
 0x693   :  { %4521 = vmatpush3.msk.msra.mxu1 %vm343_vm3, %v1525_v21  ;;  %4522 = vmatprep.mubr.msk.f32.mxu1 %vm4866_vm1, %v4864_v7  ;;  %v1837_v21 = vld [vmem:[%s5175_s12 + $0x50] sm:$0xff] }
 0x694   :  { %4536 = vmatprep.subr.mxu1 %v4864_v7 }
 0x696   :  { %4523 = vmatmul.mubr.msk.f32.vlgmr.msra.gmra.mxu1 %vm339_vm5, %v1523_v22  ;;  %v1836_v22 = vld [vmem:[%s5175_s12 + $0x48] sm:$0xff] }
 0x697   :  { %4544 = vmatprep.mubr.msk.f32.mxu1 %vm4866_vm1, %v4864_v7  ;;  %4537 = vmatpush3.msra.mxu1 %v1737_v4  ;;  %v4251_v4 = vld [vmem:[%s4189_s16] ss:$0 sm:$0xff]  ;;  %s4907_s16 = smov 31  }
 0x698   :  { %4538 = vmatprep.subr.mxu1 %v4864_v7 }
 0x73e   :  { %v579_v24 = vpop.f32.mrf.mxu1 }
 0x73f   :  { %918 = vrot.lane.b32.xlu0 %v579_v24, %s4881_s3  ;;  %v1835_v24 = vld [vmem:[%s5175_s12 + $0x40] sm:$0xff] }
 0x740   :  { %v4464_v25 = vpop.f32.mrf.mxu1 }
 0x741   :  { %v1834_v25 = vld [vmem:[%s5175_s12 + $0x38] sm:$0xff] }
 0x742   :  { %v746_v26 = vpop.f32.mrf.mxu1 }
 0x744   :  { %v4474_v27 = vpop.f32.mrf.mxu1 }
 0x745   :  { %v1832_v27 = vld [vmem:[%s5175_s12 + $0x28] sm:$0xff] }
 0x746   :  { %v913_v28 = vpop.f32.mrf.mxu1 }
 0x748   :  { %v4484_v29 = vpop.f32.mrf.mxu1 }
 0x749   :  { %v1830_v29 = vld [vmem:[%s5175_s12 + $0x18] sm:$0xff] }
 0x74a   :  { %v1096_v32 = vpop.f32.mrf.mxu1 }
 0x74c   :  { %v4494_v35 = vpop.f32.mrf.mxu1 }
 0x74e   :  { %v1263_v36 = vpop.f32.mrf.mxu1 }
 0x74f   :  { %1602 = vrot.lane.b32.xlu0 %v1263_v36, %s4881_s3 }
 0x750   :  { %v4504_v38 = vpop.f32.mrf.mxu1 }
 0x752   :  { %v1430_v39 = vpop.f32.mrf.mxu1 }
 0x753   :  { %922 = vrot.lane.b32.xlu0 %v746_v26, %s4883_s8  ;;  %1606 = vrot.lane.b32.xlu1 %v1430_v39, %s4883_s8  ;;  %v1833_v26 = vld [vmem:[%s5175_s12 + $0x30] sm:$0xff] }
 0x754   :  { %v4514_v40 = vpop.f32.mrf.mxu1 }
 0x756   :  { %v1597_v41 = vpop.f32.mrf.mxu1 }
 0x757   :  { %1610 = vrot.lane.b32.xlu1 %v1597_v41, %s4884_s9 }
 0x758   :  { %v4524_v42 = vpop.f32.mrf.mxu1 }
 0x75b   :  { %926 = vrot.lane.b32.xlu1 %v913_v28, %s4884_s9  ;;  %v1831_v28 = vld [vmem:[%s5175_s12 + $0x20] sm:$0xff] }
 0x7b1   :  { %v919_v43 = vpop.permute.xlu0 %918 }
 0x7b2   :  { %v929_v51 = vsel %vm249_vm2, %v5034_v61, %v919_v43 }
 0x7c1   :  { %v1603_v44 = vpop.permute.xlu0 %1602 }
 0x7c2   :  { %v1613_v46 = vsel %vm249_vm2, %v1096_v32, %v1603_v44  ;;  %v1828_v32 = vld [vmem:[%s5175_s12 + $0x8] sm:$0xff]  ;;  %s4188_s12 = sld [smem:[%s5585_s0 + %s4892_s7]]  }
 0x7c5   :  { %v1607_v45 = vpop.permute.xlu1 %1606  ;;  %v923_v49 = vpop.permute.xlu0 %922 }
 0x7c6   :  { %v1614_v47 = vsel %vm930_vm6, %v1613_v46, %v1607_v45  ;;  %v931_v52 = vsel %vm930_vm6, %v929_v51, %v923_v49 }
 0x7c9   :  { %v1611_v48 = vpop.permute.xlu1 %1610 }
 0x7ca   :  { %v1615_v50 = vsel %vm932_vm7, %v1614_v47, %v1611_v48 }
 0x7cb   :  { %v1617_v53 = vrot.slane %v1615_v50, 4 }
 0x7cd   :  { %v927_v54 = vpop.permute.xlu1 %926 }
 0x7ce   :  { %v933_v55 = vsel %vm932_vm7, %v931_v52, %v927_v54 }
 0x7cf   :  { %v1619_v56 = vsel %vm343_vm3, %v933_v55, %v1617_v53 }
 0x7d0   :  { %4534 = vmatmul.mubr.msk.f32.vlgmr.msra.gmra.mxu0 %vm131_vm0, %v1619_v56 }
 0x7d1   :  { %4579 = vmatprep.mubr.msk.f32.mxu0 %vm4866_vm1, %v4864_v7  ;;  %4548 = vmatpush3.msra.mxu0 %v1842_v16 }
 0x7d2   :  { %4549 = vmatprep.subr.mxu0 %v4864_v7 }
 0x7d3   :  { %4550 = vmatpush3.msra.mxu0 %v1841_v17 }
 0x7d4   :  { %4551 = vmatprep.subr.mxu0 %v4864_v7 }
 0x7d5   :  { %4552 = vmatpush3.msra.mxu0 %v1840_v18 }
 0x7d6   :  { %4553 = vmatprep.subr.mxu0 %v4864_v7 }
 0x7d7   :  { %4554 = vmatpush3.msra.mxu0 %v1839_v19 }
 0x7d8   :  { %4555 = vmatprep.subr.mxu0 %v4864_v7 }
 0x7d9   :  { %4556 = vmatpush3.msra.mxu0 %v1838_v20 }
 0x7da   :  { %4557 = vmatprep.subr.mxu0 %v4864_v7 }
 0x7db   :  { %4558 = vmatpush3.msra.mxu0 %v1837_v21 }
 0x7dc   :  { %4559 = vmatprep.subr.mxu0 %v4864_v7 }
 0x7dd   :  { %4560 = vmatpush3.msra.mxu0 %v1836_v22 }
 0x7de   :  { %4561 = vmatprep.subr.mxu0 %v4864_v7 }
 0x7df   :  { %4562 = vmatpush3.msra.mxu0 %v1835_v24 }
 0x7e0   :  { %4563 = vmatprep.subr.mxu0 %v4864_v7 }
 0x7e1   :  { %4564 = vmatpush3.msra.mxu0 %v1834_v25 }
 0x7e2   :  { %4565 = vmatprep.subr.mxu0 %v4864_v7 }
 0x7e3   :  { %4566 = vmatpush3.msra.mxu0 %v1833_v26 }
 0x7e4   :  { %4567 = vmatprep.subr.mxu0 %v4864_v7 }
 0x7e5   :  { %4568 = vmatpush3.msra.mxu0 %v1832_v27 }
 0x7e6   :  { %4569 = vmatprep.subr.mxu0 %v4864_v7 }
 0x7e7   :  { %4570 = vmatpush3.msra.mxu0 %v1831_v28 }
 0x7e8   :  { %4571 = vmatprep.subr.mxu0 %v4864_v7 }
 0x7e9   :  { %4572 = vmatpush3.msra.mxu0 %v1830_v29 }
 0x7ea   :  { %4573 = vmatprep.subr.mxu0 %v4864_v7 }
 0x7eb   :  { %4574 = vmatpush3.msra.mxu0 %v1829_v30 }
 0x7ec   :  { %4575 = vmatprep.subr.mxu0 %v4864_v7 }
 0x7ed   :  { %4576 = vmatpush3.msra.mxu0 %v1828_v32 }
 0x7ee   :  { %4577 = vmatprep.subr.mxu0 %v4864_v7 }
 0x7ef   :  { %4578 = vmatpush3.msra.mxu0 %v1827_v33 }
 0x7f0   :  { %4623 = vmatprep.subr.mxu0 %v4864_v7 }
 0x890   :  { %v1700_v61 = vpop.f32.mrf.mxu0 }
 0x891   :  { %v1701_v58 = vadd.f32 %v4243_v57, %v1700_v61  ;;  %v1953_v61 = vld [vmem:[%s4190_s6 + $0x18] sm:$0xff] }
 0x892   :  { %v4535_v59 = vpop.f32.mrf.mxu0 }
 0x893   :  { %v5149_v60 = vadd.f32 %v1701_v58, %v4917_v0  ;;  %v1736_v0 = vld [vmem:[%s4184_s17 + $0x10] sm:$0xff]  ;;  %s4890_s17 = smov 12   ;;  %v1951_v59 = vld [vmem:[%s4190_s6 + $0x8] sm:$0xff] }
 0x894   :  { %4539 = vmatpush3.msra.mxu1 %v1736_v0  ;;  %s4187_s20 = sld [smem:[%s5585_s0 + %s4890_s17]]   ;;  %v1952_v58 = vld [vmem:[%s4190_s6 + $0x10] sm:$0xff] }
 0x895   :  { %v1705_v62 = vsel %vm131_vm0, %v5149_v60, 0.0  ;;  %4540 = vmatprep.subr.mxu1 %v4864_v7 }
 0x896   :  { %1706 = vadd.xlane.f32.xlu0 %v1705_v62  ;;  %4541 = vmatpush3.msra.mxu1 %v1735_v31 }
 0x897   :  { %4542 = vmatprep.subr.mxu1 %v4864_v7 }
 0x898   :  { %4543 = vmatpush3.msra.mxu1 %v1734_v5  ;;  %v4252_v5 = vld [vmem:[%s4191_s19] ss:$0 sm:$0xff]  ;;  %s5581_s19 = sld [smem:[%s5585_s0 + %s4907_s16]]  }
 0x899   :  { %4582 = vmatprep.subr.mxu1 %v4864_v7 }
 0x89a   :  { %v4249_v47 = vld [vmem:[%s4187_s20] ss:$0 sm:$0xff]  ;;  %s4904_s20 = smov 26  }
 0x89b   :  { %s4201_s5 = sld [smem:[%s5585_s0 + %s4904_s20]]  }
 0x91f   :  { %v1707_v63 = vpop.xlane.xlu0 %1706 }
 0x920   :  { %v1708_v1 = vmul.f32 0.03125, %v1707_v63 }
 0x922   :  { %v1709_v2 = vsub.f32 %v5149_v60, %v1708_v1 }
 0x924   :  { %v1710_v3 = vmul.f32 %v1709_v2, %v1709_v2 }
 0x926   :  { %v1711_v23 = vsel %vm131_vm0, %v1710_v3, 0.0  ;;  %v4250_v3 = vld [vmem:[%s4188_s12] ss:$0 sm:$0xff]  ;;  %s4906_s12 = smov 30  }
 0x927   :  { %1712 = vadd.xlane.f32.xlu1 %v1711_v23  ;;  %s4205_s15 = sld [smem:[%s5585_s0 + %s4906_s12]]  }
 0x9b0   :  { %v1713_v6 = vpop.xlane.xlu1 %1712 }
 0x9b1   :  { %v1714_v8 = vmul.f32 0.03125, %v1713_v6 }
 0x9b3   :  { %v1715_v9 = vadd.f32 1e-06, %v1714_v8 }
 0x9b5   :  { %4820 = vrsqrt.f32 %v1715_v9 }
 0x9c2   :  { %v4821_v10 = vpop.eup %4820 }
 0x9c3   :  { %v1717_v12 = vmul.f32 %v4821_v10, %v1709_v2 }
 0x9c5   :  { %v1725_v14 = vmul.f32 %v4245_v11, %v1717_v12 }
 0x9c7   :  { %v1733_v15 = vadd.f32 %v4246_v13, %v1725_v14 }
 0x9c9   :  { %4545 = vmatmul.mubr.msk.f32.vlgmr.msra.gmra.mxu1 %vm131_vm0, %v1733_v15 }
 0x9ca   :  { %4590 = vmatprep.mubr.msk.f32.mxu1 %vm4866_vm1, %v4864_v7  ;;  %4583 = vmatpush3.msra.mxu1 %v1953_v61 }
 0x9cb   :  { %4584 = vmatprep.subr.mxu1 %v4864_v7 }
 0x9cc   :  { %4585 = vmatpush3.msra.mxu1 %v1952_v58 }
 0x9cd   :  { %4586 = vmatprep.subr.mxu1 %v4864_v7 }
 0x9ce   :  { %4587 = vmatpush3.msra.mxu1 %v1951_v59 }
 0x9cf   :  { %4588 = vmatprep.subr.mxu1 %v4864_v7 }
 0xa89   :  { %v1814_v35 = vpop.f32.mrf.mxu1 }
 0xa8a   :  { %v1815_v36 = vadd.f32 %v4247_v34, %v1814_v35 }
 0xa8b   :  { %v4546_v37 = vpop.f32.mrf.mxu1 }
 0xa8c   :  { %v1818_v38 = vmul.f32 %v1815_v36, %v1815_v36 }
 0xa8e   :  { %v1819_v39 = vmul.f32 %v1818_v38, %v1815_v36 }
 0xa90   :  { %v1820_v40 = vmul.f32 0.044715, %v1819_v39 }
 0xa92   :  { %v1821_v41 = vadd.f32 %v1820_v40, %v1815_v36 }
 0xa94   :  { %v1822_v42 = vmul.f32 0.7978846, %v1821_v41 }
 0xa96   :  { %4822 = vtanh.f32 %v1822_v42 }
 0xaa3   :  { %v4823_v43 = vpop.eup %4822 }
 0xaa4   :  { %v1824_v44 = vadd.f32 1.0, %v4823_v43 }
 0xaa6   :  { %v1825_v45 = vmul.f32 0.5, %v1824_v44 }
 0xaa8   :  { %v1826_v46 = vmul.f32 %v1825_v45, %v1815_v36 }
 0xaaa   :  { %4580 = vmatmul.mubr.f32.vlgmr.msra.gmra.mxu0 %v1826_v46 }
 0xaab   :  { %4625 = vmatprep.mubr.msk.f32.mxu0 %vm4866_vm1, %v4864_v7 }
 0xb6a   :  { %v1916_v48 = vpop.f32.mrf.mxu0 }
 0xb6b   :  { %v1917_v49 = vadd.f32 %v4249_v47, %v1916_v48 }
 0xb6c   :  { %v4581_v50 = vpop.f32.mrf.mxu0 }
 0xb6d   :  { %v5218_v51 = vadd.f32 %v1917_v49, %v5149_v60  ;;  %v1950_v60 = vld [vmem:[%s4190_s6] sm:$0xff]  ;;  %s4905_s6 = smov 28  }
 0xb6e   :  { %4589 = vmatpush3.msra.mxu1 %v1950_v60  ;;  %s4203_s11 = sld [smem:[%s5585_s0 + %s4905_s6]]  }
 0xb6f   :  { %v1921_v52 = vsel %vm131_vm0, %v5218_v51, 0.0  ;;  %4593 = vmatprep.subr.mxu1 %v4864_v7 }
 0xb70   :  { %1922 = vadd.xlane.f32.xlu0 %v1921_v52 }
 0xbf9   :  { %v1923_v53 = vpop.xlane.xlu0 %1922 }
 0xbfa   :  { %v1924_v54 = vmul.f32 0.03125, %v1923_v53 }
 0xbfc   :  { %v1925_v55 = vsub.f32 %v5218_v51, %v1924_v54 }
 0xbfe   :  { %v1926_v56 = vmul.f32 %v1925_v55, %v1925_v55 }
 0xc00   :  { %v1927_v57 = vsel %vm131_vm0, %v1926_v56, 0.0 }
 0xc01   :  { %1928 = vadd.xlane.f32.xlu0 %v1927_v57 }
 0xc8a   :  { %v1929_v62 = vpop.xlane.xlu0 %1928 }
 0xc8b   :  { %v1930_v63 = vmul.f32 0.03125, %v1929_v62 }
 0xc8d   :  { %v1931_v1 = vadd.f32 1e-06, %v1930_v63 }
 0xc8f   :  { %4824 = vrsqrt.f32 %v1931_v1 }
 0xc9c   :  { %v4825_v2 = vpop.eup %4824 }
 0xc9d   :  { %v1933_v23 = vmul.f32 %v4825_v2, %v1925_v55 }
 0xc9f   :  { %v1941_v0 = vmul.f32 %v4250_v3, %v1933_v23 }
 0xca1   :  { %v1949_v31 = vadd.f32 %v4251_v4, %v1941_v0 }
 0xca3   :  { %4591 = vmatmul.mubr.msk.f32.vlgmr.msra.gmra.mxu1 %vm131_vm0, %v1949_v31 }
 0xca4   :  { %4595 = vmatprep.mubr.msk.f32.mxu1 %vm4866_vm1, %v4864_v7 }
 0xd63   :  { %v2030_v6 = vpop.f32.mrf.mxu1 }
 0xd64   :  { %v5244_v8 = vadd.f32 %v4252_v5, %v2030_v6 }
 0xd65   :  { %v4592_v9 = vpop.f32.mrf.mxu1 }
 0xd66   :  { %2035 = vrot.lane.b32.xlu0 %v5244_v8, %s4871_s23  ;;  %v5284_v34 = vrot.slane %v5244_v8, 4 }
 0xd6a   :  { %2202 = vrot.lane.b32.xlu0 %v5244_v8, %s4872_s24 }
 0xdd8   :  { %v2036_v10 = vpop.permute.xlu0 %2035 }
 0xdd9   :  { %4594 = vmatpush3.xpose.msk.msra.mxu1 %vm249_vm2, %v2036_v10 }
 0xdda   :  { %4598 = vmatprep.subr.mxu1 %v4864_v7 }
 0xddc   :  { %4596 = vmatmul.mubr.msk.f32.vlgmr.msra.gmra.mxu1 %vm249_vm2, %v5244_v8  ;;  %v2203_v25 = vpop.permute.xlu0 %2202 }
 0xddd   :  { %4600 = vmatprep.mubr.msk.f32.mxu1 %vm4866_vm1, %v4864_v7 }
 0xe9c   :  { %v2107_v11 = vpop.f32.mrf.mxu1 }
 0xe9d   :  { %v2111_v12 = vmul.f32 0.35355338, %v2107_v11 }
 0xe9e   :  { %v4597_v13 = vpop.f32.mrf.mxu1 }
 0xe9f   :  { %v2112_v14 = vsel %vm325_vm4, %v2111_v12, -inf }
 0xea0   :  { %2113 = vmax.xlane.f32.xlu1 %v2112_v14 }
 0xeb1   :  { %2123 = vrot.lane.b32.xlu1 %v5244_v8, %s4870_s22 }
 0xf29   :  { %v2114_v15 = vpop.xlane.xlu1 %2113 }
 0xf2a   :  { %v2115_v16 = vsub.f32 %v2111_v12, %v2114_v15 }
 0xf2c   :  { %v2116_v17 = vmul.f32 1.442695, %v2115_v16 }
 0xf2d   :  { %v2124_v18 = vpop.permute.xlu1 %2123 }
 0xf2e   :  { %4826 = vpow2.f32 %v2116_v17  ;;  %4599 = vmatpush3.msk.msra.mxu1 %vm343_vm3, %v2124_v18 }
 0xf2f   :  { %4603 = vmatprep.subr.mxu1 %v4864_v7 }
 0xf3b   :  { %v4827_v19 = vpop.eup %4826 }
 0xf3c   :  { %v2118_v20 = vsel %vm325_vm4, %v4827_v19, 0.0 }
 0xf3d   :  { %2119 = vadd.xlane.f32.xlu1 %v2118_v20 }
 0xf4e   :  { %2200 = vrot.lane.b32.xlu1 %v5244_v8, %s4873_s25 }
 0xf52   :  { %2369 = vrot.lane.b32.xlu1 %v5244_v8, %s4874_s26 }
 0xfc6   :  { %v2120_v21 = vpop.xlane.xlu1 %2119 }
 0xfc7   :  { %4828 = vrcp.f32 %v2120_v21 }
 0xfca   :  { %v2201_v26 = vpop.permute.xlu1 %2200 }
 0xfce   :  { %v2370_v41 = vpop.permute.xlu1 %2369 }
 0xfd4   :  { %v4829_v22 = vpop.eup %4828 }
 0xfd5   :  { %v2122_v24 = vmul.f32 %v4829_v22, %v4827_v19 }
 0xfd7   :  { %4601 = vmatmul.mubr.msk.f32.vlgmr.msra.gmra.mxu1 %vm339_vm5, %v2122_v24 }
 0xfd8   :  { %4604 = vmatpush3.xpose.msk.msra.mxu1 %vm249_vm2, %v2203_v25  ;;  %4605 = vmatprep.mubr.msk.f32.mxu1 %vm4866_vm1, %v4864_v7 }
 0xfd9   :  { %4608 = vmatprep.subr.mxu1 %v4864_v7 }
 0xfdb   :  { %4606 = vmatmul.mubr.msk.f32.vlgmr.msra.gmra.mxu1 %vm249_vm2, %v2201_v26 }
 0xfdc   :  { %4610 = vmatprep.mubr.msk.f32.mxu1 %vm4866_vm1, %v4864_v7 }
0x1097   :  { %v5274_v27 = vpop.f32.mrf.mxu1 }
0x1099   :  { %v4602_v28 = vpop.f32.mrf.mxu1 }
0x109b   :  { %v2274_v29 = vpop.f32.mrf.mxu1 }
0x109c   :  { %v2278_v30 = vmul.f32 0.35355338, %v2274_v29 }
0x109d   :  { %v4607_v32 = vpop.f32.mrf.mxu1 }
0x109e   :  { %v2279_v33 = vsel %vm325_vm4, %v2278_v30, -inf }
0x109f   :  { %2280 = vmax.xlane.f32.xlu0 %v2279_v33 }
0x10b5   :  { %2290 = vrot.lane.b32.xlu0 %v5244_v8, %s4878_s30 }
0x10b9   :  { %2367 = vrot.lane.b32.xlu0 %v5244_v8, %s4876_s28 }
0x10bd   :  { %2534 = vrot.lane.b32.xlu0 %v5244_v8, %s4877_s29 }
0x10c1   :  { %2884 = vrot.lane.b32.xlu0 %v5284_v34, %s4872_s24  ;;  %s4901_s24 = smov 27  }
0x10c5   :  { %3051 = vrot.lane.b32.xlu0 %v5284_v34, %s4874_s26  ;;  %s4895_s26 = smov 18  }
0x10c9   :  { %3218 = vrot.lane.b32.xlu0 %v5284_v34, %s4875_s27 }
0x1128   :  { %v2281_v35 = vpop.xlane.xlu0 %2280 }
0x1129   :  { %v2282_v36 = vsub.f32 %v2278_v30, %v2281_v35 }
0x112b   :  { %v2283_v37 = vmul.f32 1.442695, %v2282_v36 }
0x112c   :  { %v2291_v38 = vpop.permute.xlu0 %2290 }
0x112d   :  { %4830 = vpow2.f32 %v2283_v37  ;;  %4609 = vmatpush3.msk.msra.mxu1 %vm343_vm3, %v2291_v38 }
0x112e   :  { %4613 = vmatprep.subr.mxu1 %v4864_v7 }
0x1130   :  { %v2368_v42 = vpop.permute.xlu0 %2367 }
0x1134   :  { %v2535_v44 = vpop.permute.xlu0 %2534 }
0x1138   :  { %v2885_v46 = vpop.permute.xlu0 %2884 }
0x113a   :  { %v4831_v39 = vpop.eup %4830 }
0x113b   :  { %v2285_v40 = vsel %vm325_vm4, %v4831_v39, 0.0 }
0x113c   :  { %2286 = vadd.xlane.f32.xlu1 %v2285_v40  ;;  %v3052_v50 = vpop.permute.xlu0 %3051 }
0x1140   :  { %v3219_v54 = vpop.permute.xlu0 %3218 }
0x114d   :  { %2536 = vrot.lane.b32.xlu1 %v5244_v8, %s4875_s27  ;;  %s4902_s27 = smov 29  }
0x1151   :  { %2717 = vrot.lane.b32.xlu1 %v5284_v34, %s4871_s23  ;;  %s4199_s23 = sld [smem:[%s5585_s0 + %s4884_s9]]  }
0x1155   :  { %2882 = vrot.lane.b32.xlu1 %v5284_v34, %s4873_s25 }
0x1159   :  { %3049 = vrot.lane.b32.xlu1 %v5284_v34, %s4876_s28 }
0x115d   :  { %3216 = vrot.lane.b32.xlu1 %v5284_v34, %s4877_s29  ;;  %s4193_s29 = sld [smem:[%s5585_s0 + %s4895_s26]]  }
0x11c5   :  { %v2287_v43 = vpop.xlane.xlu1 %2286 }
0x11c6   :  { %4832 = vrcp.f32 %v2287_v43 }
0x11c9   :  { %v2537_v45 = vpop.permute.xlu1 %2536 }
0x11ca   :  { %4624 = vmatpush3.xpose.msk.msra.mxu0 %vm249_vm2, %v2537_v45 }
0x11cb   :  { %4633 = vmatprep.subr.mxu0 %v4864_v7 }
0x11cd   :  { %v2718_v47 = vpop.permute.xlu1 %2717  ;;  %4626 = vmatmul.mubr.msk.f32.vlgmr.msra.gmra.mxu0 %vm249_vm2, %v2535_v44 }
0x11ce   :  { %4634 = vmatpush3.xpose.msk.msra.mxu0 %vm249_vm2, %v2718_v47  ;;  %4635 = vmatprep.mubr.msk.f32.mxu0 %vm4866_vm1, %v4864_v7 }
0x11cf   :  { %4643 = vmatprep.subr.mxu0 %v4864_v7 }
0x11d1   :  { %v2883_v48 = vpop.permute.xlu1 %2882  ;;  %4636 = vmatmul.mubr.msk.f32.vlgmr.msra.gmra.mxu0 %vm249_vm2, %v5284_v34 }
0x11d2   :  { %4644 = vmatpush3.xpose.msk.msra.mxu0 %vm249_vm2, %v2885_v46  ;;  %4645 = vmatprep.mubr.msk.f32.mxu0 %vm4866_vm1, %v4864_v7 }
0x11d3   :  { %v4833_v49 = vpop.eup %4832  ;;  %4653 = vmatprep.subr.mxu0 %v4864_v7 }
0x11d4   :  { %v2289_v52 = vmul.f32 %v4833_v49, %v4831_v39 }
0x11d5   :  { %4646 = vmatmul.mubr.msk.f32.vlgmr.msra.gmra.mxu0 %vm249_vm2, %v2883_v48  ;;  %v3050_v53 = vpop.permute.xlu1 %3049 }
0x11d6   :  { %4611 = vmatmul.mubr.msk.f32.vlgmr.msra.gmra.mxu1 %vm339_vm5, %v2289_v52  ;;  %4654 = vmatpush3.xpose.msk.msra.mxu0 %vm249_vm2, %v3052_v50 }
0x11d7   :  { %4614 = vmatpush3.xpose.msk.msra.mxu1 %vm249_vm2, %v2370_v41  ;;  %4655 = vmatprep.mubr.msk.f32.mxu0 %vm4866_vm1, %v4864_v7 }
0x11d8   :  { %4615 = vmatprep.mubr.msk.f32.mxu1 %vm4866_vm1, %v4864_v7  ;;  %4663 = vmatprep.subr.mxu0 %v4864_v7 }
0x11d9   :  { %4656 = vmatmul.mubr.msk.f32.vlgmr.msra.gmra.mxu0 %vm249_vm2, %v3050_v53  ;;  %4618 = vmatprep.subr.mxu1 %v4864_v7  ;;  %v3217_v55 = vpop.permute.xlu1 %3216 }
0x11da   :  { %4616 = vmatmul.mubr.msk.f32.vlgmr.msra.gmra.mxu1 %vm249_vm2, %v2368_v42  ;;  %4664 = vmatpush3.xpose.msk.msra.mxu0 %vm249_vm2, %v3219_v54 }
0x11db   :  { %4665 = vmatprep.mubr.msk.f32.mxu0 %vm4866_vm1, %v4864_v7  ;;  %4620 = vmatprep.mubr.msk.f32.mxu1 %vm4866_vm1, %v4864_v7 }
0x11dc   :  { %4673 = vmatprep.subr.mxu0 %v4864_v7 }
0x11dd   :  { %4666 = vmatmul.mubr.msk.f32.vlgmr.msra.gmra.mxu0 %vm249_vm2, %v3217_v55 }
0x11de   :  { %4681 = vmatprep.mubr.msk.f32.mxu0 %vm4866_vm1, %v4864_v7 }
0x128d   :  { %v2608_v56 = vpop.f32.mrf.mxu0 }
0x128e   :  { %v2612_v57 = vmul.f32 0.35355338, %v2608_v56 }
0x128f   :  { %v4627_v61 = vpop.f32.mrf.mxu0 }
0x1290   :  { %v2613_v58 = vsel %vm325_vm4, %v2612_v57, -inf }
0x1291   :  { %2614 = vmax.xlane.f32.xlu1 %v2613_v58  ;;  %v2789_v59 = vpop.f32.mrf.mxu0 }
0x1292   :  { %v2793_v5 = vmul.f32 0.35355338, %v2789_v59 }
0x1293   :  { %v4637_v60 = vpop.f32.mrf.mxu0 }
0x1294   :  { %v2794_v14 = vsel %vm325_vm4, %v2793_v5, -inf }
0x1295   :  { %v2956_v62 = vpop.f32.mrf.mxu0 }
0x1296   :  { %v5340_v63 = vpop.f32.mrf.mxu1  ;;  %v2960_v13 = vmul.f32 0.35355338, %v2956_v62 }
0x1297   :  { %v4647_v1 = vpop.f32.mrf.mxu0 }
0x1298   :  { %v4612_v2 = vpop.f32.mrf.mxu1  ;;  %v2961_v16 = vsel %vm325_vm4, %v2960_v13, -inf }
0x1299   :  { %v3123_v3 = vpop.f32.mrf.mxu0 }
0x129a   :  { %v2441_v23 = vpop.f32.mrf.mxu1  ;;  %v3127_v15 = vmul.f32 0.35355338, %v3123_v3 }
0x129b   :  { %v2445_v4 = vmul.f32 0.35355338, %v2441_v23  ;;  %v4657_v0 = vpop.f32.mrf.mxu0 }
0x129c   :  { %v4617_v31 = vpop.f32.mrf.mxu1  ;;  %v3128_v17 = vsel %vm325_vm4, %v3127_v15, -inf }
0x129d   :  { %v3290_v6 = vpop.f32.mrf.mxu0  ;;  %v2446_v9 = vsel %vm325_vm4, %v2445_v4, -inf }
0x129e   :  { %v3294_v10 = vmul.f32 0.35355338, %v3290_v6  ;;  %2447 = vmax.xlane.f32.xlu0 %v2446_v9 }
0x129f   :  { %v4667_v11 = vpop.f32.mrf.mxu0 }
0x12a0   :  { %v3295_v12 = vsel %vm325_vm4, %v3294_v10, -inf }
0x12a1   :  { %3296 = vmax.xlane.f32.xlu1 %v3295_v12 }
0x12a2   :  { %2795 = vmax.xlane.f32.xlu0 %v2794_v14 }
0x12a6   :  { %2962 = vmax.xlane.f32.xlu0 %v2961_v16 }
0x12aa   :  { %3129 = vmax.xlane.f32.xlu0 %v3128_v17 }
0x131a   :  { %v2615_v18 = vpop.xlane.xlu1 %2614 }
0x131b   :  { %v2616_v19 = vsub.f32 %v2612_v57, %v2615_v18 }
0x131d   :  { %v2617_v20 = vmul.f32 1.442695, %v2616_v19 }
0x131f   :  { %4834 = vpow2.f32 %v2617_v20 }
0x1327   :  { %v2448_v21 = vpop.xlane.xlu0 %2447 }
0x1328   :  { %v2449_v35 = vsub.f32 %v2445_v4, %v2448_v21 }
0x132a   :  { %v3297_v22 = vpop.xlane.xlu1 %3296  ;;  %v2450_v40 = vmul.f32 1.442695, %v2449_v35 }
0x132b   :  { %v2796_v24 = vpop.xlane.xlu0 %2795  ;;  %v3298_v29 = vsub.f32 %v3294_v10, %v3297_v22 }
0x132c   :  { %v5347_v25 = vpop.eup %4834  ;;  %v2797_v26 = vsub.f32 %v2793_v5, %v2796_v24 }
0x132d   :  { %v2619_v28 = vsel %vm325_vm4, %v5347_v25, 0.0  ;;  %v3299_v36 = vmul.f32 1.442695, %v3298_v29 }
0x132e   :  { %v2798_v30 = vmul.f32 1.442695, %v2797_v26  ;;  %2620 = vadd.xlane.f32.xlu1 %v2619_v28 }
0x132f   :  { %v2963_v32 = vpop.xlane.xlu0 %2962 }
0x1330   :  { %4836 = vpow2.f32 %v2798_v30  ;;  %v2964_v33 = vsub.f32 %v2960_v13, %v2963_v32 }
0x1332   :  { %v2965_v37 = vmul.f32 1.442695, %v2964_v33 }
0x1333   :  { %v3130_v38 = vpop.xlane.xlu0 %3129 }
0x1334   :  { %4838 = vpow2.f32 %v2965_v37  ;;  %v3131_v39 = vsub.f32 %v3127_v15, %v3130_v38 }
0x1335   :  { %4840 = vpow2.f32 %v3299_v36 }
0x1336   :  { %v3132_v41 = vmul.f32 1.442695, %v3131_v39 }
0x1338   :  { %4842 = vpow2.f32 %v3132_v41 }
0x1339   :  { %4844 = vpow2.f32 %v2450_v40 }
0x133d   :  { %v4837_v42 = vpop.eup %4836 }
0x133e   :  { %v2800_v43 = vsel %vm325_vm4, %v4837_v42, 0.0 }
0x133f   :  { %2801 = vadd.xlane.f32.xlu0 %v2800_v43 }
0x1341   :  { %v4839_v44 = vpop.eup %4838 }
0x1342   :  { %v2967_v45 = vsel %vm325_vm4, %v4839_v44, 0.0  ;;  %v5353_v46 = vpop.eup %4840 }
0x1343   :  { %2968 = vadd.xlane.f32.xlu1 %v2967_v45  ;;  %v3301_v49 = vsel %vm325_vm4, %v5353_v46, 0.0  ;;  %v4286_v45 = vld [vmem:[%s4193_s29] ss:$0 sm:$0xff] }
0x1345   :  { %v4843_v47 = vpop.eup %4842 }
0x1346   :  { %v3134_v48 = vsel %vm325_vm4, %v4843_v47, 0.0  ;;  %v4845_v50 = vpop.eup %4844 }
0x1347   :  { %3135 = vadd.xlane.f32.xlu0 %v3134_v48  ;;  %3302 = vadd.xlane.f32.xlu1 %v3301_v49  ;;  %v2452_v52 = vsel %vm325_vm4, %v4845_v50, 0.0 }
0x134b   :  { %2453 = vadd.xlane.f32.xlu0 %v2452_v52 }
0x1358   :  { %2624 = vrot.lane.b32.xlu1 %v5244_v8, %s4879_s1 }
0x135c   :  { %2805 = vrot.lane.b32.xlu1 %v5284_v34, %s4870_s22  ;;  %s4894_s22 = smov 17  }
0x135d   :  { %s4192_s25 = sld [smem:[%s5585_s0 + %s4894_s22]]  }
0x1360   :  { %2972 = vrot.lane.b32.xlu1 %v5284_v34, %s4878_s30  ;;  %s4896_s30 = smov 21  }
0x1361   :  { %2457 = vrot.lane.b32.xlu0 %v5244_v8, %s4880_s2 }
0x1363   :  { %v3405_v15 = vld [vmem:[%s4192_s25 + $0x18] sm:$0xff]  ;;  %v3404_v17 = vld [vmem:[%s4192_s25 + $0x10] sm:$0xff]  ;;  %v3403_v18 = vld [vmem:[%s4192_s25 + $0x8] sm:$0xff] }
0x1364   :  { %3306 = vrot.lane.b32.xlu1 %v5284_v34, %s4879_s1  ;;  %4674 = vmatpush3.msra.mxu0 %v3405_v15  ;;  %v3402_v21 = vld [vmem:[%s4192_s25] sm:$0xff]  ;;  %v3611_v15 = vld [vmem:[%s5457_s14 + $0x10] sm:$0xff]  ;;  %s4903_s1 = smov 25  }
0x1365   :  { %3139 = vrot.lane.b32.xlu0 %v5284_v34, %s4880_s2  ;;  %4675 = vmatprep.subr.mxu0 %v4864_v7 }
0x1366   :  { %4676 = vmatpush3.msra.mxu0 %v3404_v17  ;;  %v3609_v17 = vld [vmem:[%s5457_s14] sm:$0xff] }
0x1367   :  { %4677 = vmatprep.subr.mxu0 %v4864_v7 }
0x1368   :  { %4678 = vmatpush3.msra.mxu0 %v3403_v18  ;;  %v4290_v18 = vld [vmem:[%s4197_s18] ss:$0 sm:$0xff] }
0x1369   :  { %2702 = vrot.lane.b32.xlu0 %v5340_v63, %s4881_s3  ;;  %4679 = vmatprep.subr.mxu0 %v4864_v7 }
0x136a   :  { %4680 = vmatpush3.msra.mxu0 %v3402_v21 }
0x136b   :  { %4695 = vmatprep.subr.mxu0 %v4864_v7 }
0x13b7   :  { %v2621_v55 = vpop.xlane.xlu1 %2620 }
0x13c8   :  { %v2802_v53 = vpop.xlane.xlu0 %2801 }
0x13cc   :  { %v2969_v57 = vpop.xlane.xlu1 %2968 }
0x13d0   :  { %v3136_v54 = vpop.xlane.xlu0 %3135  ;;  %v3303_v8 = vpop.xlane.xlu1 %3302 }
0x13d4   :  { %v2454_v56 = vpop.xlane.xlu0 %2453  ;;  %v2625_v58 = vpop.permute.xlu1 %2624 }
0x13d5   :  { %4846 = vrcp.f32 %v2454_v56 }
0x13d6   :  { %4848 = vrcp.f32 %v2621_v55 }
0x13d7   :  { %4850 = vrcp.f32 %v2802_v53 }
0x13d8   :  { %v2458_v61 = vpop.permute.xlu0 %2457  ;;  %4852 = vrcp.f32 %v2969_v57  ;;  %v2806_v62 = vpop.permute.xlu1 %2805 }
0x13d9   :  { %4619 = vmatpush3.msk.msra.mxu1 %vm343_vm3, %v2458_v61  ;;  %4854 = vrcp.f32 %v3136_v54 }
0x13da   :  { %4628 = vmatprep.subr.mxu1 %v4864_v7  ;;  %4856 = vrcp.f32 %v3303_v8 }
0x13dc   :  { %v2973_v23 = vpop.permute.xlu1 %2972  ;;  %v3140_v31 = vpop.permute.xlu0 %3139 }
0x13e0   :  { %v3307_v9 = vpop.permute.xlu1 %3306  ;;  %v2703_v29 = vpop.permute.xlu0 %2702 }
0x13e1   :  { %v2713_v39 = vsel %vm249_vm2, %v5274_v27, %v2703_v29 }
0x13e2   :  { %v4847_v34 = vpop.eup %4846 }
0x13e3   :  { %v2456_v59 = vmul.f32 %v4847_v34, %v4845_v50  ;;  %v4849_v60 = vpop.eup %4848 }
0x13e4   :  { %v2623_v63 = vmul.f32 %v4849_v60, %v5347_v25  ;;  %v4851_v1 = vpop.eup %4850 }
0x13e5   :  { %4621 = vmatmul.mubr.msk.f32.vlgmr.msra.gmra.mxu1 %vm339_vm5, %v2456_v59  ;;  %v2804_v2 = vmul.f32 %v4851_v1, %v4837_v42  ;;  %v4853_v3 = vpop.eup %4852 }
0x13e6   :  { %4629 = vmatpush3.msk.msra.mxu1 %vm343_vm3, %v2625_v58  ;;  %4630 = vmatprep.mubr.msk.f32.mxu1 %vm4866_vm1, %v4864_v7  ;;  %v2971_v4 = vmul.f32 %v4853_v3, %v4839_v44  ;;  %v4855_v0 = vpop.eup %4854  ;;  %v3624_v3 = vld [vmem:[%s5457_s14 + $0x78] sm:$0xff] }
0x13e7   :  { %4638 = vmatprep.subr.mxu1 %v4864_v7  ;;  %v3138_v5 = vmul.f32 %v4855_v0, %v4843_v47  ;;  %v4857_v6 = vpop.eup %4856  ;;  %v3621_v0 = vld [vmem:[%s5457_s14 + $0x60] sm:$0xff] }
0x13e8   :  { %v3305_v10 = vmul.f32 %v4857_v6, %v5353_v46  ;;  %v3618_v6 = vld [vmem:[%s5457_s14 + $0x48] sm:$0xff] }
0x13e9   :  { %4631 = vmatmul.mubr.msk.f32.vlgmr.msra.gmra.mxu1 %vm339_vm5, %v2623_v63  ;;  %v4289_v63 = vld [vmem:[%s4195_s10] ss:$0 sm:$0xff] }
0x13ea   :  { %4639 = vmatpush3.msk.msra.mxu1 %vm343_vm3, %v2806_v62  ;;  %4640 = vmatprep.mubr.msk.f32.mxu1 %vm4866_vm1, %v4864_v7 }
0x13eb   :  { %4648 = vmatprep.subr.mxu1 %v4864_v7 }
0x13ed   :  { %4641 = vmatmul.mubr.msk.f32.vlgmr.msra.gmra.mxu1 %vm339_vm5, %v2804_v2 }
0x13ee   :  { %4649 = vmatpush3.msk.msra.mxu1 %vm343_vm3, %v2973_v23  ;;  %4650 = vmatprep.mubr.msk.f32.mxu1 %vm4866_vm1, %v4864_v7  ;;  %v3623_v23 = vld [vmem:[%s5457_s14 + $0x70] sm:$0xff] }
0x13ef   :  { %4658 = vmatprep.subr.mxu1 %v4864_v7 }
0x13f1   :  { %4651 = vmatmul.mubr.msk.f32.vlgmr.msra.gmra.mxu1 %vm339_vm5, %v2971_v4  ;;  %v3622_v4 = vld [vmem:[%s5457_s14 + $0x68] sm:$0xff] }
0x13f2   :  { %4659 = vmatpush3.msk.msra.mxu1 %vm343_vm3, %v3140_v31  ;;  %4660 = vmatprep.mubr.msk.f32.mxu1 %vm4866_vm1, %v4864_v7  ;;  %v3620_v31 = vld [vmem:[%s5457_s14 + $0x58] sm:$0xff] }
0x13f3   :  { %4668 = vmatprep.subr.mxu1 %v4864_v7 }
0x13f5   :  { %4661 = vmatmul.mubr.msk.f32.vlgmr.msra.gmra.mxu1 %vm339_vm5, %v3138_v5  ;;  %v3619_v5 = vld [vmem:[%s5457_s14 + $0x50] sm:$0xff] }
0x13f6   :  { %4669 = vmatpush3.msk.msra.mxu1 %vm343_vm3, %v3307_v9  ;;  %4670 = vmatprep.mubr.msk.f32.mxu1 %vm4866_vm1, %v4864_v7  ;;  %v3617_v9 = vld [vmem:[%s5457_s14 + $0x40] sm:$0xff] }
0x13f7   :  { %4684 = vmatprep.subr.mxu1 %v4864_v7 }
0x13f9   :  { %4671 = vmatmul.mubr.msk.f32.vlgmr.msra.gmra.mxu1 %vm339_vm5, %v3305_v10  ;;  %v3616_v10 = vld [vmem:[%s5457_s14 + $0x38] sm:$0xff] }
0x13fa   :  { %4692 = vmatprep.mubr.msk.f32.mxu1 %vm4866_vm1, %v4864_v7 }
0x14a5   :  { %v2530_v11 = vpop.f32.mrf.mxu1 }
0x14a7   :  { %v4622_v12 = vpop.f32.mrf.mxu1 }
0x14a8   :  { %v3614_v12 = vld [vmem:[%s5457_s14 + $0x28] sm:$0xff] }
0x14a9   :  { %v2697_v13 = vpop.f32.mrf.mxu1 }
0x14ab   :  { %v4632_v14 = vpop.f32.mrf.mxu1 }
0x14ac   :  { %v3612_v14 = vld [vmem:[%s5457_s14 + $0x18] sm:$0xff] }
0x14ad   :  { %v2878_v16 = vpop.f32.mrf.mxu1 }
0x14af   :  { %v4642_v19 = vpop.f32.mrf.mxu1 }
0x14b1   :  { %v3045_v20 = vpop.f32.mrf.mxu1 }
0x14b2   :  { %3384 = vrot.lane.b32.xlu0 %v3045_v20, %s4881_s3  ;;  %s4196_s3 = sld [smem:[%s5585_s0 + %s4896_s30]]  }
0x14b3   :  { %v4652_v22 = vpop.f32.mrf.mxu1  ;;  %s5510_s30 = sld [smem:[%s5585_s0 + %s4902_s27]]  }
0x14b5   :  { %v3212_v24 = vpop.f32.mrf.mxu1 }
0x14b6   :  { %2706 = vrot.lane.b32.xlu0 %v2530_v11, %s4883_s8  ;;  %3388 = vrot.lane.b32.xlu1 %v3212_v24, %s4883_s8  ;;  %s4897_s8 = smov 19   ;;  %v3615_v11 = vld [vmem:[%s5457_s14 + $0x30] sm:$0xff] }
0x14b7   :  { %v4662_v25 = vpop.f32.mrf.mxu1  ;;  %s4194_s4 = sld [smem:[%s5585_s0 + %s4897_s8]]  }
0x14b8   :  { %v3519_v56 = vld [vmem:[%s4196_s3 + $0x18] sm:$0xff]  ;;  %v3517_v57 = vld [vmem:[%s4196_s3 + $0x8] sm:$0xff]  ;;  %v3516_v61 = vld [vmem:[%s4196_s3] sm:$0xff]  ;;  %s4200_s8 = sld [smem:[%s5585_s0 + %s4903_s1]]  }
0x14b9   :  { %v3379_v26 = vpop.f32.mrf.mxu1  ;;  %4685 = vmatpush3.msra.mxu1 %v3519_v56  ;;  %v3874_v56 = vld [vmem:[%s5510_s30 + $0x110] sm:$0xff] }
0x14ba   :  { %3392 = vrot.lane.b32.xlu1 %v3379_v26, %s4884_s9  ;;  %4686 = vmatprep.subr.mxu1 %v4864_v7 }
0x14bb   :  { %v4672_v28 = vpop.f32.mrf.mxu1 }
0x14bd   :  { %v4288_v60 = vld [vmem:[%s4194_s4] ss:$0 sm:$0xff] }
0x14be   :  { %2710 = vrot.lane.b32.xlu1 %v2697_v13, %s4884_s9  ;;  %v3613_v13 = vld [vmem:[%s5457_s14 + $0x20] sm:$0xff]  ;;  %s4202_s9 = sld [smem:[%s5585_s0 + %s4901_s24]]  }
0x1524   :  { %v3385_v30 = vpop.permute.xlu0 %3384 }
0x1525   :  { %v3395_v33 = vsel %vm249_vm2, %v2878_v16, %v3385_v30  ;;  %v3610_v16 = vld [vmem:[%s5457_s14 + $0x8] sm:$0xff] }
0x1528   :  { %v3389_v32 = vpop.permute.xlu1 %3388  ;;  %v2707_v37 = vpop.permute.xlu0 %2706 }
0x1529   :  { %v3396_v35 = vsel %vm930_vm6, %v3395_v33, %v3389_v32  ;;  %v2714_v40 = vsel %vm930_vm6, %v2713_v39, %v2707_v37 }
0x152c   :  { %v3393_v36 = vpop.permute.xlu1 %3392 }
0x152d   :  { %v3397_v38 = vsel %vm932_vm7, %v3396_v35, %v3393_v36  ;;  %v4292_v35 = vld [vmem:[%s4199_s23] ss:$0 sm:$0xff] }
0x152e   :  { %v3399_v41 = vrot.slane %v3397_v38, 4 }
0x1530   :  { %v2711_v42 = vpop.permute.xlu1 %2710 }
0x1531   :  { %v2715_v43 = vsel %vm932_vm7, %v2714_v40, %v2711_v42 }
0x1532   :  { %v3401_v44 = vsel %vm343_vm3, %v2715_v43, %v3399_v41 }
0x1533   :  { %4682 = vmatmul.mubr.msk.f32.vlgmr.msra.gmra.mxu0 %vm131_vm0, %v3401_v44 }
0x1534   :  { %4727 = vmatprep.mubr.msk.f32.mxu0 %vm4866_vm1, %v4864_v7  ;;  %4696 = vmatpush3.msra.mxu0 %v3624_v3 }
0x1535   :  { %4697 = vmatprep.subr.mxu0 %v4864_v7 }
0x1536   :  { %4698 = vmatpush3.msra.mxu0 %v3623_v23 }
0x1537   :  { %4699 = vmatprep.subr.mxu0 %v4864_v7 }
0x1538   :  { %4700 = vmatpush3.msra.mxu0 %v3622_v4 }
0x1539   :  { %4701 = vmatprep.subr.mxu0 %v4864_v7 }
0x153a   :  { %4702 = vmatpush3.msra.mxu0 %v3621_v0 }
0x153b   :  { %4703 = vmatprep.subr.mxu0 %v4864_v7 }
0x153c   :  { %4704 = vmatpush3.msra.mxu0 %v3620_v31 }
0x153d   :  { %4705 = vmatprep.subr.mxu0 %v4864_v7 }
0x153e   :  { %4706 = vmatpush3.msra.mxu0 %v3619_v5 }
0x153f   :  { %4707 = vmatprep.subr.mxu0 %v4864_v7 }
0x1540   :  { %4708 = vmatpush3.msra.mxu0 %v3618_v6 }
0x1541   :  { %4709 = vmatprep.subr.mxu0 %v4864_v7 }
0x1542   :  { %4710 = vmatpush3.msra.mxu0 %v3617_v9 }
0x1543   :  { %4711 = vmatprep.subr.mxu0 %v4864_v7 }
0x1544   :  { %4712 = vmatpush3.msra.mxu0 %v3616_v10 }
0x1545   :  { %4713 = vmatprep.subr.mxu0 %v4864_v7 }
0x1546   :  { %4714 = vmatpush3.msra.mxu0 %v3615_v11 }
0x1547   :  { %4715 = vmatprep.subr.mxu0 %v4864_v7 }
0x1548   :  { %4716 = vmatpush3.msra.mxu0 %v3614_v12 }
0x1549   :  { %4717 = vmatprep.subr.mxu0 %v4864_v7 }
0x154a   :  { %4718 = vmatpush3.msra.mxu0 %v3613_v13 }
0x154b   :  { %4719 = vmatprep.subr.mxu0 %v4864_v7 }
0x154c   :  { %4720 = vmatpush3.msra.mxu0 %v3612_v14 }
0x154d   :  { %4721 = vmatprep.subr.mxu0 %v4864_v7 }
0x154e   :  { %4722 = vmatpush3.msra.mxu0 %v3611_v15 }
0x154f   :  { %4723 = vmatprep.subr.mxu0 %v4864_v7 }
0x1550   :  { %4724 = vmatpush3.msra.mxu0 %v3610_v16 }
0x1551   :  { %4725 = vmatprep.subr.mxu0 %v4864_v7 }
0x1552   :  { %4726 = vmatpush3.msra.mxu0 %v3609_v17 }
0x15f3   :  { %v3482_v27 = vpop.f32.mrf.mxu0 }
0x15f4   :  { %v3483_v46 = vadd.f32 %v4286_v45, %v3482_v27  ;;  %v3758_v27 = vld [vmem:[%s4202_s9 + $0x18] sm:$0xff] }
0x15f5   :  { %v4683_v47 = vpop.f32.mrf.mxu0 }
0x15f6   :  { %v5432_v48 = vadd.f32 %v3483_v46, %v5218_v51  ;;  %v3518_v51 = vld [vmem:[%s4196_s3 + $0x10] sm:$0xff]  ;;  %v3756_v47 = vld [vmem:[%s4202_s9 + $0x8] sm:$0xff] }
0x15f7   :  { %4687 = vmatpush3.msra.mxu1 %v3518_v51  ;;  %v3757_v46 = vld [vmem:[%s4202_s9 + $0x10] sm:$0xff]  ;;  %v3869_v51 = vld [vmem:[%s5510_s30 + $0xe8] sm:$0xff] }
0x15f8   :  { %v3487_v49 = vsel %vm131_vm0, %v5432_v48, 0.0  ;;  %4688 = vmatprep.subr.mxu1 %v4864_v7 }
0x15f9   :  { %3488 = vadd.xlane.f32.xlu0 %v3487_v49  ;;  %4689 = vmatpush3.msra.mxu1 %v3517_v57  ;;  %v3883_v49 = vld [vmem:[%s5510_s30 + $0x158] sm:$0xff]  ;;  %v3868_v57 = vld [vmem:[%s5510_s30 + $0xe0] sm:$0xff] }
0x15fa   :  { %4690 = vmatprep.subr.mxu1 %v4864_v7 }
0x15fb   :  { %4691 = vmatpush3.msra.mxu1 %v3516_v61  ;;  %v3863_v61 = vld [vmem:[%s5510_s30 + $0xb8] sm:$0xff] }
0x15fc   :  { %4730 = vmatprep.subr.mxu1 %v4864_v7 }
0x1682   :  { %v3489_v50 = vpop.xlane.xlu0 %3488 }
0x1683   :  { %v3490_v52 = vmul.f32 0.03125, %v3489_v50  ;;  %v3887_v50 = vld [vmem:[%s5510_s30 + $0x178] sm:$0xff] }
0x1684   :  { %4082 = vmatprep.subr.mxu0 %v3887_v50 }
0x1685   :  { %v3491_v53 = vsub.f32 %v5432_v48, %v3490_v52  ;;  %v3886_v52 = vld [vmem:[%s5510_s30 + $0x170] sm:$0xff] }
0x1687   :  { %v3492_v54 = vmul.f32 %v3491_v53, %v3491_v53 }
0x1689   :  { %v3493_v55 = vsel %vm131_vm0, %v3492_v54, 0.0  ;;  %v3880_v54 = vld [vmem:[%s5510_s30 + $0x140] sm:$0xff] }
0x168a   :  { %3494 = vadd.xlane.f32.xlu1 %v3493_v55  ;;  %v3875_v55 = vld [vmem:[%s5510_s30 + $0x118] sm:$0xff] }
0x1713   :  { %v3495_v8 = vpop.xlane.xlu1 %3494 }
0x1714   :  { %v3496_v58 = vmul.f32 0.03125, %v3495_v8  ;;  %v3862_v8 = vld [vmem:[%s5510_s30 + $0xb0] sm:$0xff] }
0x1716   :  { %v3497_v34 = vadd.f32 1e-06, %v3496_v58  ;;  %v3857_v58 = vld [vmem:[%s5510_s30 + $0x88] sm:$0xff] }
0x1718   :  { %4858 = vrsqrt.f32 %v3497_v34 }
0x1725   :  { %v4859_v59 = vpop.eup %4858 }
0x1726   :  { %v3499_v62 = vmul.f32 %v4859_v59, %v3491_v53  ;;  %v3881_v53 = vld [vmem:[%s5510_s30 + $0x148] sm:$0xff] }
0x1728   :  { %v3507_v1 = vmul.f32 %v4288_v60, %v3499_v62 }
0x172a   :  { %v3515_v2 = vadd.f32 %v4289_v63, %v3507_v1  ;;  %v4293_v63 = vld [vmem:[%s4200_s8] ss:$0 sm:$0xff] }
0x172c   :  { %4693 = vmatmul.mubr.msk.f32.vlgmr.msra.gmra.mxu1 %vm131_vm0, %v3515_v2  ;;  %v4294_v2 = vld [vmem:[%s4201_s5] ss:$0 sm:$0xff] }
0x172d   :  { %4738 = vmatprep.mubr.msk.f32.mxu1 %vm4866_vm1, %v4864_v7  ;;  %4731 = vmatpush3.msra.mxu1 %v3758_v27  ;;  %v3844_v27 = vld [vmem:[%s5510_s30 + $0x20] sm:$0xff] }
0x172e   :  { %4732 = vmatprep.subr.mxu1 %v4864_v7 }
0x172f   :  { %4733 = vmatpush3.msra.mxu1 %v3757_v46  ;;  %v4295_v46 = vld [vmem:[%s4203_s11] ss:$0 sm:$0xff] }
0x1730   :  { %4734 = vmatprep.subr.mxu1 %v4864_v7 }
0x1731   :  { %4735 = vmatpush3.msra.mxu1 %v3756_v47 }
0x1732   :  { %4736 = vmatprep.subr.mxu1 %v4864_v7 }
0x17ec   :  { %v3596_v19 = vpop.f32.mrf.mxu1 }
0x17ed   :  { %v3597_v20 = vadd.f32 %v4290_v18, %v3596_v19 }
0x17ee   :  { %v4694_v21 = vpop.f32.mrf.mxu1 }
0x17ef   :  { %v3600_v22 = vmul.f32 %v3597_v20, %v3597_v20  ;;  %v3882_v21 = vld [vmem:[%s5510_s30 + $0x150] sm:$0xff] }
0x17f1   :  { %v3601_v24 = vmul.f32 %v3600_v22, %v3597_v20 }
0x17f3   :  { %v3602_v25 = vmul.f32 0.044715, %v3601_v24  ;;  %v3877_v24 = vld [vmem:[%s5510_s30 + $0x128] sm:$0xff] }
0x17f5   :  { %v3603_v26 = vadd.f32 %v3602_v25, %v3597_v20  ;;  %v3876_v25 = vld [vmem:[%s5510_s30 + $0x120] sm:$0xff] }
0x17f7   :  { %v3604_v28 = vmul.f32 0.7978846, %v3603_v26  ;;  %v3871_v26 = vld [vmem:[%s5510_s30 + $0xf8] sm:$0xff] }
0x17f9   :  { %4860 = vtanh.f32 %v3604_v28  ;;  %v3870_v28 = vld [vmem:[%s5510_s30 + $0xf0] sm:$0xff] }
0x1806   :  { %v4861_v29 = vpop.eup %4860 }
0x1807   :  { %v3606_v30 = vadd.f32 1.0, %v4861_v29  ;;  %v3865_v29 = vld [vmem:[%s5510_s30 + $0xc8] sm:$0xff] }
0x1809   :  { %v3607_v32 = vmul.f32 0.5, %v3606_v30  ;;  %v3864_v30 = vld [vmem:[%s5510_s30 + $0xc0] sm:$0xff] }
0x180b   :  { %v3608_v33 = vmul.f32 %v3607_v32, %v3597_v20  ;;  %v3859_v32 = vld [vmem:[%s5510_s30 + $0x98] sm:$0xff] }
0x180d   :  { %4728 = vmatmul.mubr.f32.vlgmr.msra.gmra.mxu0 %v3608_v33  ;;  %v3858_v33 = vld [vmem:[%s5510_s30 + $0x90] sm:$0xff] }
0x180e   :  { %4130 = vmatprep.mubr.f32.mxu0 %v4864_v7  ;;  %4083 = vmatpush1.msra.mxu0 %v3886_v52  ;;  %v3884_v52 = vld [vmem:[%s5510_s30 + $0x160] sm:$0xff] }
0x180f   :  { %4084 = vmatprep.subr.mxu0 %v3881_v53  ;;  %v3879_v53 = vld [vmem:[%s5510_s30 + $0x138] sm:$0xff] }
0x1810   :  { %4085 = vmatpush1.msra.mxu0 %v3880_v54  ;;  %v3878_v54 = vld [vmem:[%s5510_s30 + $0x130] sm:$0xff] }
0x1811   :  { %4086 = vmatprep.subr.mxu0 %v3875_v55  ;;  %v3873_v55 = vld [vmem:[%s5510_s30 + $0x108] sm:$0xff] }
0x1812   :  { %4087 = vmatpush1.msra.mxu0 %v3874_v56  ;;  %v3872_v56 = vld [vmem:[%s5510_s30 + $0x100] sm:$0xff] }
0x1813   :  { %4088 = vmatprep.subr.mxu0 %v3869_v51  ;;  %v3867_v51 = vld [vmem:[%s5510_s30 + $0xd8] sm:$0xff] }
0x1814   :  { %4089 = vmatpush1.msra.mxu0 %v3868_v57  ;;  %v3866_v57 = vld [vmem:[%s5510_s30 + $0xd0] sm:$0xff] }
0x1815   :  { %4090 = vmatprep.subr.mxu0 %v3863_v61  ;;  %v3861_v61 = vld [vmem:[%s5510_s30 + $0xa8] sm:$0xff] }
0x1816   :  { %4091 = vmatpush1.msra.mxu0 %v3862_v8  ;;  %v3860_v8 = vld [vmem:[%s5510_s30 + $0xa0] sm:$0xff] }
0x1817   :  { %4092 = vmatprep.subr.mxu0 %v3857_v58  ;;  %v3855_v58 = vld [vmem:[%s5510_s30 + $0x78] sm:$0xff] }
0x18cd   :  { %v3698_v36 = vpop.f32.mrf.mxu0 }
0x18ce   :  { %v3699_v37 = vadd.f32 %v4292_v35, %v3698_v36  ;;  %v3853_v35 = vld [vmem:[%s5510_s30 + $0x68] sm:$0xff]  ;;  %v3852_v36 = vld [vmem:[%s5510_s30 + $0x60] sm:$0xff] }
0x18cf   :  { %v4729_v38 = vpop.f32.mrf.mxu0 }
0x18d0   :  { %v3702_v39 = vadd.f32 %v3699_v37, %v5432_v48  ;;  %v3755_v48 = vld [vmem:[%s4202_s9] sm:$0xff]  ;;  %v3847_v37 = vld [vmem:[%s5510_s30 + $0x38] sm:$0xff] }
0x18d1   :  { %4737 = vmatpush3.msra.mxu1 %v3755_v48  ;;  %v3856_v38 = vld [vmem:[%s5510_s30 + $0x80] sm:$0xff] }
0x18d2   :  { %v3703_v40 = vsel %vm131_vm0, %v3702_v39, 0.0  ;;  %3940 = vmatprep.subr.mxu1 %v3883_v49  ;;  %4093 = vmatpush1.msra.mxu0 %v3856_v38 }
0x18d3   :  { %3704 = vadd.xlane.f32.xlu0 %v3703_v40  ;;  %v3851_v40 = vld [vmem:[%s5510_s30 + $0x58] sm:$0xff] }
0x18d4   :  { %4094 = vmatprep.subr.mxu0 %v3851_v40 }
0x195c   :  { %v3705_v41 = vpop.xlane.xlu0 %3704 }
0x195d   :  { %v3706_v42 = vmul.f32 0.03125, %v3705_v41  ;;  %v3841_v41 = vld [vmem:[%s5510_s30 + $0x8] sm:$0xff] }
0x195f   :  { %v3707_v43 = vsub.f32 %v3702_v39, %v3706_v42  ;;  %v3846_v39 = vld [vmem:[%s5510_s30 + $0x30] sm:$0xff] }
0x1960   :  { %v3850_v42 = vld [vmem:[%s5510_s30 + $0x50] sm:$0xff] }
0x1961   :  { %v3708_v44 = vmul.f32 %v3707_v43, %v3707_v43  ;;  %4095 = vmatpush1.msra.mxu0 %v3850_v42 }
0x1963   :  { %v3709_v45 = vsel %vm131_vm0, %v3708_v44, 0.0  ;;  %v3845_v44 = vld [vmem:[%s5510_s30 + $0x28] sm:$0xff] }
0x1964   :  { %3710 = vadd.xlane.f32.xlu0 %v3709_v45  ;;  %v3885_v45 = vld [vmem:[%s5510_s30 + $0x168] sm:$0xff]  ;;  %4096 = vmatprep.subr.mxu0 %v3845_v44 }
0x1965   :  { %4097 = vmatpush1.msra.mxu0 %v3844_v27 }
0x19ed   :  { %v3711_v34 = vpop.xlane.xlu0 %3710 }
0x19ee   :  { %v3712_v59 = vmul.f32 0.03125, %v3711_v34  ;;  %v3854_v34 = vld [vmem:[%s5510_s30 + $0x70] sm:$0xff] }
0x19f0   :  { %v3713_v60 = vadd.f32 1e-06, %v3712_v59  ;;  %v3848_v59 = vld [vmem:[%s5510_s30 + $0x40] sm:$0xff] }
0x19f2   :  { %4862 = vrsqrt.f32 %v3713_v60  ;;  %v3843_v60 = vld [vmem:[%s5510_s30 + $0x18] sm:$0xff] }
0x19ff   :  { %v4863_v62 = vpop.eup %4862 }
0x1a00   :  { %v3715_v1 = vmul.f32 %v4863_v62, %v3707_v43  ;;  %v3840_v43 = vld [vmem:[%s5510_s30] sm:$0xff]  ;;  %v3842_v62 = vld [vmem:[%s5510_s30 + $0x10] sm:$0xff] }
0x1a02   :  { %v3723_v3 = vmul.f32 %v4293_v63, %v3715_v1  ;;  %v3890_v63 = vlaneseq }
0x1a04   :  { %v3731_v23 = vadd.f32 %v4294_v2, %v3723_v3  ;;  %v3891_v1 = vshrl.u32 %v3890_v63, 7 }
0x1a06   :  { %v3733_v4 = vsel %vm3732_vm8, %v3731_v23, 0.0  ;;  %v3743_v0 = vrot.slane %v3731_v23, 4  ;;  %v3908_v2 = vsub.s32 4, %v3891_v1  ;;  %v3912_v3 = vsub.s32 5, %v3891_v1  ;;  %v3888_v23 = vld [vmem:[%s4205_s15] sm:$0x3f] }
0x1a07   :  { %v3734_v31 = vrot.slane %v3733_v4, 4 }
0x1a08   :  { %v3745_v5 = vsel %vm3732_vm8, %v3743_v0, 0.0  ;;  %v3913_v0 = vrot.slane %v3888_v23, %v3912_v3 }
0x1a09   :  { %v3735_v6 = vadd.f32 %v3734_v31, %v3733_v4  ;;  %v3746_v9 = vrot.slane %v3745_v5, 4  ;;  %v3909_v4 = vrot.slane %v3888_v23, %v3908_v2 }
0x1a0b   :  { %v3736_v10 = vrot.slane %v3735_v6, 2  ;;  %v3747_v11 = vadd.f32 %v3746_v9, %v3745_v5 }
0x1a0d   :  { %v3737_v12 = vadd.f32 %v3736_v10, %v3735_v6  ;;  %v3748_v13 = vrot.slane %v3747_v11, 2 }
0x1a0f   :  { %v3738_v14 = vrot.slane %v3737_v12, 1  ;;  %v3749_v15 = vadd.f32 %v3748_v13, %v3747_v11  ;;  %v3896_v11 = vsub.s32 1, %v3891_v1  ;;  %v3892_v13 = vsub.s32 0, %v3891_v1 }
0x1a11   :  { %v3739_v16 = vadd.f32 %v3738_v14, %v3737_v12  ;;  %v3750_v17 = vrot.slane %v3749_v15, 1  ;;  %v3897_v14 = vrot.slane %v3888_v23, %v3896_v11 }
0x1a13   :  { %v3751_v18 = vadd.f32 %v3750_v17, %v3749_v15  ;;  %v3741_v19 = vmul.f32 0.25, %v3739_v16  ;;  %v4908_v15 = vmov 1983009808   ;;  %v3900_v17 = vsub.s32 2, %v3891_v1 }
0x1a14   :  { %v4146_v16 = vunpack.c.l.s4 %v4908_v15 }
0x1a15   :  { %v3752_v20 = vmul.f32 0.25, %v3751_v18  ;;  %v3904_v18 = vsub.s32 3, %v3891_v1 }
0x1a17   :  { %v3754_v22 = vsel %vm3753_vm9, %v3741_v19, %v3752_v20  ;;  %v3893_v20 = vrot.slane %v3888_v23, %v3892_v13 }
0x1a18   :  { %4739 = vmatmul.mubr.msk.f32.vlgmr.msra.gmra.mxu1 %vm131_vm0, %v3754_v22  ;;  %v4147_v22 = vunpack.c.0.s8 %v4146_v16 }
0x1a19   :  { %3941 = vmatpush1.msra.mxu1 %v3882_v21  ;;  %3988 = vmatprep.mubr.f32.mxu1 %v4864_v7 }
0x1a1a   :  { %3942 = vmatprep.subr.mxu1 %v3877_v24  ;;  %v3901_v24 = vrot.slane %v3888_v23, %v3900_v17 }
0x1a1b   :  { %3943 = vmatpush1.msra.mxu1 %v3876_v25  ;;  %v3905_v25 = vrot.slane %v3888_v23, %v3904_v18 }
0x1a1c   :  { %3944 = vmatprep.subr.mxu1 %v3871_v26 }
0x1a1d   :  { %3945 = vmatpush1.msra.mxu1 %v3870_v28 }
0x1a1e   :  { %3946 = vmatprep.subr.mxu1 %v3865_v29 }
0x1a1f   :  { %3947 = vmatpush1.msra.mxu1 %v3864_v30 }
0x1a20   :  { %3948 = vmatprep.subr.mxu1 %v3859_v32  ;;  %v4150_v32 = vsub.s32 %v4147_v22, %v3891_v1 }
0x1a21   :  { %3949 = vmatpush1.msra.mxu1 %v3858_v33 }
0x1a22   :  { %3950 = vmatprep.subr.mxu1 %v3853_v35 }
0x1a23   :  { %3951 = vmatpush1.msra.mxu1 %v3852_v36 }
0x1a24   :  { %3952 = vmatprep.subr.mxu1 %v3847_v37 }
0x1a25   :  { %3953 = vmatpush1.msra.mxu1 %v3846_v39 }
0x1a26   :  { %3954 = vmatprep.subr.mxu1 %v3841_v41 }
0x1a27   :  { %3955 = vmatpush1.msra.mxu1 %v3840_v43 }
0x1a28   :  { %4011 = vmatprep.subr.mxu1 %v3885_v45 }
0x1ad8   :  { %v3835_v47 = vpop.f32.mrf.mxu1 }
0x1ad9   :  { %v3836_v48 = vadd.f32 %v4295_v46, %v3835_v47 }
0x1ada   :  { %v4740_v49 = vpop.f32.mrf.mxu1 }
0x1adb   :  { %v3839_v50 = vmax.f32 %v3836_v48, 0.0 }
0x1add   :  { %4297 = vmatmul.mubr.msk.f32.vlgmr.msra.gmra.mxu1 %vm3920_vm10, %v3839_v50  ;;  %4299 = vmatmul.mubr.msk.f32.vlgmr.msra.gmra.mxu0 %vm3920_vm10, %v3839_v50 }
0x1ade   :  { %4012 = vmatpush1.msra.mxu1 %v3884_v52  ;;  %4059 = vmatprep.mubr.f32.mxu1 %v4864_v7  ;;  %v3849_v7 = vld [vmem:[%s5510_s30 + $0x48] sm:$0xff] }
0x1adf   :  { %4013 = vmatprep.subr.mxu1 %v3879_v53 }
0x1ae0   :  { %4014 = vmatpush1.msra.mxu1 %v3878_v54 }
0x1ae1   :  { %4015 = vmatprep.subr.mxu1 %v3873_v55 }
0x1ae2   :  { %4016 = vmatpush1.msra.mxu1 %v3872_v56 }
0x1ae3   :  { %4017 = vmatprep.subr.mxu1 %v3867_v51 }
0x1ae4   :  { %4018 = vmatpush1.msra.mxu1 %v3866_v57 }
0x1ae5   :  { %4019 = vmatprep.subr.mxu1 %v3861_v61 }
0x1ae6   :  { %4020 = vmatpush1.msra.mxu1 %v3860_v8 }
0x1ae7   :  { %4021 = vmatprep.subr.mxu1 %v3855_v58 }
0x1ae8   :  { %4022 = vmatpush1.msra.mxu1 %v3854_v34 }
0x1ae9   :  { %4023 = vmatprep.subr.mxu1 %v3849_v7 }
0x1aea   :  { %4024 = vmatpush1.msra.mxu1 %v3848_v59 }
0x1aeb   :  { %4025 = vmatprep.subr.mxu1 %v3843_v60 }
0x1aec   :  { %4026 = vmatpush1.msra.mxu1 %v3842_v62 }
0x1aed   :  { %4298 = vmatmul.mubr.msk.f32.vlgmr.msra.gmra.mxu1 %vm3920_vm10, %v3839_v50 }
0x1b9d   :  { %v4132_v31 = vpop.f32.mrf.mxu0  ;;  %v3990_v12 = vpop.f32.mrf.mxu1 }
0x1b9e   :  { %v4133_v6 = vadd.f32 %v4132_v31, %v3909_v4  ;;  %v3991_v28 = vadd.f32 %v3990_v12, %v3893_v20 }
0x1b9f   :  { %v4134_v5 = vpop.f32.mrf.mxu0  ;;  %v3992_v19 = vpop.f32.mrf.mxu1 }
0x1ba0   :  { %v4135_v9 = vadd.f32 %v4134_v5, %v3913_v0  ;;  %v3993_v21 = vadd.f32 %v3992_v19, %v3897_v14 }
0x1ba2   :  { %v4160_v10 = vcombine.low %v4133_v6, %v4135_v9  ;;  %v4143_v30 = vcombine.low %v3991_v28, %v3993_v21 }
0x1ba4   :  { %4300 = vst.sshfl [vmem:[%s5581_s19 + $0x8] sm:$0x33 pattern:$0x76325410] %v4160_v10  ;;  %v4151_v37 = vrot.slane %v4143_v30, %v4150_v32 }
0x1bad   :  { %v4061_v26 = vpop.f32.mrf.mxu1 }
0x1bae   :  { %v4062_v33 = vadd.f32 %v4061_v26, %v3901_v24 }
0x1baf   :  { %v4063_v29 = vpop.f32.mrf.mxu1 }
0x1bb0   :  { %v4064_v35 = vadd.f32 %v4063_v29, %v3905_v25 }
0x1bb2   :  { %v4144_v36 = vcombine.low %v4062_v33, %v4064_v35 }
0x1bb4   :  { %v4158_v38 = vrot.slane %v4144_v36, %v4150_v32 }
0x1bb6   :  { %v4159_v39 = vcombine.low %v4151_v37, %v4158_v38 }
0x1bb8   :  { %4170 = vst [vmem:[%s5581_s19] sm:$0xff] %v4159_v39 }

</bundles_post_ra>
